<compile_context>
chip_gen: v5e
topology: v5e:2x2
jax: 0.10.0
libtpu: 0.0.40
codegen_flags: <defaults>
</compile_context>

<pallas_src>
import functools

import jax
import jax.numpy as jnp
from jax.experimental import pallas as pl
from jax.experimental.pallas import tpu as pltpu


# ------------------------------ fused kernel --------------------------------
def _fused_rnn_kernel(x_ref, *refs, num_layers, T, Bp, H):
    """Fused multi-layer LSTM + MLP head.

    x_ref: (T*Bp, D_in), time-major, batch padded to Bp (multiple of 8).
    refs : per-layer (w_ih (D,4H), w_hh (H,4H), b (1,4H)) * num_layers,
           then fc (w1, b1, w2, b2, w3, b3), then out_ref (Bp, num_classes).
    """
    lstm_refs = refs[:3 * num_layers]
    (w1_ref, b1_ref, w2_ref, b2_ref,
     w3_ref, b3_ref) = refs[3 * num_layers:3 * num_layers + 6]
    out_ref = refs[3 * num_layers + 6]

    seq = x_ref[...]                          # (T*Bp, D_in) whole sequence
    h = None
    for layer in range(num_layers):
        w_ih = lstm_refs[3 * layer][...]      # (D_in, 4H)
        w_hh = lstm_refs[3 * layer + 1][...]  # (H, 4H)
        bias = lstm_refs[3 * layer + 2][...]  # (1, 4H) == b_ih + b_hh

        # Bulk input projection for all timesteps at once (off the serial
        # recurrence); bias is added once here, not per step.
        xproj = jnp.dot(seq, w_ih, preferred_element_type=jnp.float32) + bias

        h = jnp.zeros((Bp, H), jnp.float32)   # h0 = 0
        c = jnp.zeros((Bp, H), jnp.float32)   # c0 = 0
        hs = []
        for t in range(T):                    # fully unrolled serial recurrence
            gates = xproj[t * Bp:(t + 1) * Bp, :] + jnp.dot(
                h, w_hh, preferred_element_type=jnp.float32)   # (Bp, 4H)
            # PyTorch gate order [i, f, g, o]
            i = jax.nn.sigmoid(gates[:, 0 * H:1 * H])
            f = jax.nn.sigmoid(gates[:, 1 * H:2 * H])
            g = jnp.tanh(gates[:, 2 * H:3 * H])
            o = jax.nn.sigmoid(gates[:, 3 * H:4 * H])
            c = f * c + i * g
            h = o * jnp.tanh(c)
            if layer < num_layers - 1:
                hs.append(h)
        if layer < num_layers - 1:
            # Inter-layer activations never leave VMEM/vregs.
            seq = jnp.concatenate(hs, axis=0)   # (T*Bp, H)

    # MLP head on the last timestep of the last layer (== h).
    z1 = jnp.maximum(
        jnp.dot(h, w1_ref[...], preferred_element_type=jnp.float32)
        + b1_ref[...], 0.0)
    z2 = jnp.maximum(
        jnp.dot(z1, w2_ref[...], preferred_element_type=jnp.float32)
        + b2_ref[...], 0.0)
    out_ref[...] = (
        jnp.dot(z2, w3_ref[...], preferred_element_type=jnp.float32)
        + b3_ref[...])


# ------------------------------ parameters ----------------------------------
def init_params(key, input_size, hidden_size, num_layers, num_classes):
    params = {"lstm": [], "fc": []}
    H = hidden_size
    scale_lstm = 1.0 / jnp.sqrt(jnp.float32(H))
    for layer in range(num_layers):
        d_in = input_size if layer == 0 else H
        key, k1, k2, k3, k4 = jax.random.split(key, 5)
        # stored transposed relative to PyTorch (so we can do x @ W)
        w_ih = jax.random.uniform(k1, (d_in, 4 * H), jnp.float32,
                                  -scale_lstm, scale_lstm)
        w_hh = jax.random.uniform(k2, (H, 4 * H), jnp.float32,
                                  -scale_lstm, scale_lstm)
        b_ih = jax.random.uniform(k3, (1, 4 * H), jnp.float32,
                                  -scale_lstm, scale_lstm)
        b_hh = jax.random.uniform(k4, (1, 4 * H), jnp.float32,
                                  -scale_lstm, scale_lstm)
        params["lstm"].append((w_ih, w_hh, b_ih + b_hh))

    Hh = H // 2
    fc_dims = [(H, Hh), (Hh, Hh), (Hh, num_classes)]
    for (din, dout) in fc_dims:
        key, kw, kb = jax.random.split(key, 3)
        s = 1.0 / jnp.sqrt(jnp.float32(din))
        w = jax.random.uniform(kw, (din, dout), jnp.float32, -s, s)
        b = jax.random.uniform(kb, (1, dout), jnp.float32, -s, s)
        params["fc"] += [w, b]
    return params


# ------------------------------ full forward ---------------------------------
@jax.jit
def rnn_forward(x, params):
    """x: (B, T, input_size) batch-first, like the PyTorch module."""
    x = x.astype(jnp.float32)
    B, T, D = x.shape
    Bp = ((B + 7) // 8) * 8                       # pad batch to full sublanes
    xt = jnp.transpose(x, (1, 0, 2))              # (T, B, D) time-major
    xt = jnp.pad(xt, ((0, 0), (0, Bp - B), (0, 0)))
    x_flat = xt.reshape(T * Bp, D)                # (T*Bp, D)

    lstm_flat = []
    for (w_ih, w_hh, b) in params["lstm"]:
        lstm_flat += [w_ih, w_hh, b]
    inputs = [x_flat] + lstm_flat + list(params["fc"])

    num_layers = len(params["lstm"])
    H = params["lstm"][0][1].shape[0]
    num_classes = params["fc"][4].shape[1]

    kern = functools.partial(_fused_rnn_kernel,
                             num_layers=num_layers, T=T, Bp=Bp, H=H)
    out = pl.pallas_call(
        kern,
        out_shape=jax.ShapeDtypeStruct((Bp, num_classes), jnp.float32),
        in_specs=[pl.BlockSpec(memory_space=pltpu.MemorySpace.VMEM)]
                 * len(inputs),
        out_specs=pl.BlockSpec(memory_space=pltpu.MemorySpace.VMEM),
    )(*inputs)
    return out[:B]                                # drop batch padding


if __name__ == "__main__":
    input_size = 16
    hidden_size = 32
    num_layers = 2
    num_classes = 8
    batch = 2
    seq_len = 8

    key = jax.random.PRNGKey(0)
    kx, kp = jax.random.split(key)
    x = jax.random.normal(kx, (batch, seq_len, input_size), dtype=jnp.float32)
    params = init_params(kp, input_size, hidden_size, num_layers, num_classes)

    out = rnn_forward(x, params)
    jax.block_until_ready(out)
    assert out.shape == (batch, num_classes)
    print("KERNEL_OK")
</pallas_src>

<mosaic_0001>
module attributes {stable_mosaic.version = 11 : i64} {
  func.func @_fused_rnn_kernel(%arg0: memref<64x16xf32, #tpu.memory_space<vmem>>, %arg1: memref<16x128xf32, #tpu.memory_space<vmem>>, %arg2: memref<32x128xf32, #tpu.memory_space<vmem>>, %arg3: memref<1x128xf32, #tpu.memory_space<vmem>>, %arg4: memref<32x128xf32, #tpu.memory_space<vmem>>, %arg5: memref<32x128xf32, #tpu.memory_space<vmem>>, %arg6: memref<1x128xf32, #tpu.memory_space<vmem>>, %arg7: memref<32x16xf32, #tpu.memory_space<vmem>>, %arg8: memref<1x16xf32, #tpu.memory_space<vmem>>, %arg9: memref<16x16xf32, #tpu.memory_space<vmem>>, %arg10: memref<1x16xf32, #tpu.memory_space<vmem>>, %arg11: memref<16x8xf32, #tpu.memory_space<vmem>>, %arg12: memref<1x8xf32, #tpu.memory_space<vmem>>, %arg13: memref<8x8xf32, #tpu.memory_space<vmem>>) attributes {dimension_semantics = [], scalar_prefetch = 0 : i64, scratch_operands = 0 : i64, tpu.core_type = #tpu.core_type<tc>} {
    %c0 = arith.constant 0 : index
    %c0_0 = arith.constant 0 : index
    %0 = vector.load %arg0[%c0, %c0_0] : memref<64x16xf32, #tpu.memory_space<vmem>>, vector<64x16xf32>
    %c0_1 = arith.constant 0 : index
    %c0_2 = arith.constant 0 : index
    %1 = vector.load %arg1[%c0_1, %c0_2] : memref<16x128xf32, #tpu.memory_space<vmem>>, vector<16x128xf32>
    %c0_3 = arith.constant 0 : index
    %c0_4 = arith.constant 0 : index
    %2 = vector.load %arg2[%c0_3, %c0_4] : memref<32x128xf32, #tpu.memory_space<vmem>>, vector<32x128xf32>
    %c0_5 = arith.constant 0 : index
    %c0_6 = arith.constant 0 : index
    %3 = vector.load %arg3[%c0_5, %c0_6] : memref<1x128xf32, #tpu.memory_space<vmem>>, vector<1x128xf32>
    %cst = arith.constant dense<0.000000e+00> : vector<64x128xf32>
    %4 = tpu.matmul %0, %1, %cst {dimension_numbers = #tpu.dot_dimension_numbers<[1], [0], [0], [1], [0, 0, 1, 1], [], []>} : vector<64x16xf32>, vector<16x128xf32>, vector<64x128xf32> -> vector<64x128xf32>
    %5 = vector.broadcast %3 : vector<1x128xf32> to vector<64x128xf32>
    %6 = arith.addf %4, %5 : vector<64x128xf32>
    %cst_7 = arith.constant 0.000000e+00 : f32
    %7 = vector.broadcast %cst_7 : f32 to vector<8x32xf32>
    %cst_8 = arith.constant 0.000000e+00 : f32
    %8 = vector.broadcast %cst_8 : f32 to vector<8x32xf32>
    %9 = vector.extract_strided_slice %6 {offsets = [0, 0], sizes = [8, 128], strides = [1, 1]} : vector<64x128xf32> to vector<8x128xf32>
    %cst_9 = arith.constant dense<0.000000e+00> : vector<8x128xf32>
    %10 = tpu.matmul %7, %2, %cst_9 {dimension_numbers = #tpu.dot_dimension_numbers<[1], [0], [0], [1], [0, 0, 1, 1], [], []>} : vector<8x32xf32>, vector<32x128xf32>, vector<8x128xf32> -> vector<8x128xf32>
    %11 = arith.addf %9, %10 : vector<8x128xf32>
    %12 = vector.extract_strided_slice %11 {offsets = [0, 0], sizes = [8, 32], strides = [1, 1]} : vector<8x128xf32> to vector<8x32xf32>
    %13 = arith.negf %12 : vector<8x32xf32>
    %14 = math.exp %13 : vector<8x32xf32>
    %cst_10 = arith.constant 1.000000e+00 : f32
    %15 = vector.broadcast %cst_10 : f32 to vector<8x32xf32>
    %16 = arith.addf %15, %14 : vector<8x32xf32>
    %17 = arith.divf %15, %16 : vector<8x32xf32>
    %18 = vector.extract_strided_slice %11 {offsets = [0, 32], sizes = [8, 32], strides = [1, 1]} : vector<8x128xf32> to vector<8x32xf32>
    %19 = arith.negf %18 : vector<8x32xf32>
    %20 = math.exp %19 : vector<8x32xf32>
    %cst_11 = arith.constant 1.000000e+00 : f32
    %21 = vector.broadcast %cst_11 : f32 to vector<8x32xf32>
    %22 = arith.addf %21, %20 : vector<8x32xf32>
    %23 = arith.divf %21, %22 : vector<8x32xf32>
    %24 = vector.extract_strided_slice %11 {offsets = [0, 64], sizes = [8, 32], strides = [1, 1]} : vector<8x128xf32> to vector<8x32xf32>
    %25 = math.tanh %24 : vector<8x32xf32>
    %26 = vector.extract_strided_slice %11 {offsets = [0, 96], sizes = [8, 32], strides = [1, 1]} : vector<8x128xf32> to vector<8x32xf32>
    %27 = arith.negf %26 : vector<8x32xf32>
    %28 = math.exp %27 : vector<8x32xf32>
    %cst_12 = arith.constant 1.000000e+00 : f32
    %29 = vector.broadcast %cst_12 : f32 to vector<8x32xf32>
    %30 = arith.addf %29, %28 : vector<8x32xf32>
    %31 = arith.divf %29, %30 : vector<8x32xf32>
    %32 = arith.mulf %23, %8 : vector<8x32xf32>
    %33 = arith.mulf %17, %25 : vector<8x32xf32>
    %34 = arith.addf %32, %33 : vector<8x32xf32>
    %35 = math.tanh %34 : vector<8x32xf32>
    %36 = arith.mulf %31, %35 : vector<8x32xf32>
    %37 = vector.extract_strided_slice %6 {offsets = [8, 0], sizes = [8, 128], strides = [1, 1]} : vector<64x128xf32> to vector<8x128xf32>
    %cst_13 = arith.constant dense<0.000000e+00> : vector<8x128xf32>
    %38 = tpu.matmul %36, %2, %cst_13 {dimension_numbers = #tpu.dot_dimension_numbers<[1], [0], [0], [1], [0, 0, 1, 1], [], []>} : vector<8x32xf32>, vector<32x128xf32>, vector<8x128xf32> -> vector<8x128xf32>
    %39 = arith.addf %37, %38 : vector<8x128xf32>
    %40 = vector.extract_strided_slice %39 {offsets = [0, 0], sizes = [8, 32], strides = [1, 1]} : vector<8x128xf32> to vector<8x32xf32>
    %41 = arith.negf %40 : vector<8x32xf32>
    %42 = math.exp %41 : vector<8x32xf32>
    %cst_14 = arith.constant 1.000000e+00 : f32
    %43 = vector.broadcast %cst_14 : f32 to vector<8x32xf32>
    %44 = arith.addf %43, %42 : vector<8x32xf32>
    %45 = arith.divf %43, %44 : vector<8x32xf32>
    %46 = vector.extract_strided_slice %39 {offsets = [0, 32], sizes = [8, 32], strides = [1, 1]} : vector<8x128xf32> to vector<8x32xf32>
    %47 = arith.negf %46 : vector<8x32xf32>
    %48 = math.exp %47 : vector<8x32xf32>
    %cst_15 = arith.constant 1.000000e+00 : f32
    %49 = vector.broadcast %cst_15 : f32 to vector<8x32xf32>
    %50 = arith.addf %49, %48 : vector<8x32xf32>
    %51 = arith.divf %49, %50 : vector<8x32xf32>
    %52 = vector.extract_strided_slice %39 {offsets = [0, 64], sizes = [8, 32], strides = [1, 1]} : vector<8x128xf32> to vector<8x32xf32>
    %53 = math.tanh %52 : vector<8x32xf32>
    %54 = vector.extract_strided_slice %39 {offsets = [0, 96], sizes = [8, 32], strides = [1, 1]} : vector<8x128xf32> to vector<8x32xf32>
    %55 = arith.negf %54 : vector<8x32xf32>
    %56 = math.exp %55 : vector<8x32xf32>
    %cst_16 = arith.constant 1.000000e+00 : f32
    %57 = vector.broadcast %cst_16 : f32 to vector<8x32xf32>
    %58 = arith.addf %57, %56 : vector<8x32xf32>
    %59 = arith.divf %57, %58 : vector<8x32xf32>
    %60 = arith.mulf %51, %34 : vector<8x32xf32>
    %61 = arith.mulf %45, %53 : vector<8x32xf32>
    %62 = arith.addf %60, %61 : vector<8x32xf32>
    %63 = math.tanh %62 : vector<8x32xf32>
    %64 = arith.mulf %59, %63 : vector<8x32xf32>
    %65 = vector.extract_strided_slice %6 {offsets = [16, 0], sizes = [8, 128], strides = [1, 1]} : vector<64x128xf32> to vector<8x128xf32>
    %cst_17 = arith.constant dense<0.000000e+00> : vector<8x128xf32>
    %66 = tpu.matmul %64, %2, %cst_17 {dimension_numbers = #tpu.dot_dimension_numbers<[1], [0], [0], [1], [0, 0, 1, 1], [], []>} : vector<8x32xf32>, vector<32x128xf32>, vector<8x128xf32> -> vector<8x128xf32>
    %67 = arith.addf %65, %66 : vector<8x128xf32>
    %68 = vector.extract_strided_slice %67 {offsets = [0, 0], sizes = [8, 32], strides = [1, 1]} : vector<8x128xf32> to vector<8x32xf32>
    %69 = arith.negf %68 : vector<8x32xf32>
    %70 = math.exp %69 : vector<8x32xf32>
    %cst_18 = arith.constant 1.000000e+00 : f32
    %71 = vector.broadcast %cst_18 : f32 to vector<8x32xf32>
    %72 = arith.addf %71, %70 : vector<8x32xf32>
    %73 = arith.divf %71, %72 : vector<8x32xf32>
    %74 = vector.extract_strided_slice %67 {offsets = [0, 32], sizes = [8, 32], strides = [1, 1]} : vector<8x128xf32> to vector<8x32xf32>
    %75 = arith.negf %74 : vector<8x32xf32>
    %76 = math.exp %75 : vector<8x32xf32>
    %cst_19 = arith.constant 1.000000e+00 : f32
    %77 = vector.broadcast %cst_19 : f32 to vector<8x32xf32>
    %78 = arith.addf %77, %76 : vector<8x32xf32>
    %79 = arith.divf %77, %78 : vector<8x32xf32>
    %80 = vector.extract_strided_slice %67 {offsets = [0, 64], sizes = [8, 32], strides = [1, 1]} : vector<8x128xf32> to vector<8x32xf32>
    %81 = math.tanh %80 : vector<8x32xf32>
    %82 = vector.extract_strided_slice %67 {offsets = [0, 96], sizes = [8, 32], strides = [1, 1]} : vector<8x128xf32> to vector<8x32xf32>
    %83 = arith.negf %82 : vector<8x32xf32>
    %84 = math.exp %83 : vector<8x32xf32>
    %cst_20 = arith.constant 1.000000e+00 : f32
    %85 = vector.broadcast %cst_20 : f32 to vector<8x32xf32>
    %86 = arith.addf %85, %84 : vector<8x32xf32>
    %87 = arith.divf %85, %86 : vector<8x32xf32>
    %88 = arith.mulf %79, %62 : vector<8x32xf32>
    %89 = arith.mulf %73, %81 : vector<8x32xf32>
    %90 = arith.addf %88, %89 : vector<8x32xf32>
    %91 = math.tanh %90 : vector<8x32xf32>
    %92 = arith.mulf %87, %91 : vector<8x32xf32>
    %93 = vector.extract_strided_slice %6 {offsets = [24, 0], sizes = [8, 128], strides = [1, 1]} : vector<64x128xf32> to vector<8x128xf32>
    %cst_21 = arith.constant dense<0.000000e+00> : vector<8x128xf32>
    %94 = tpu.matmul %92, %2, %cst_21 {dimension_numbers = #tpu.dot_dimension_numbers<[1], [0], [0], [1], [0, 0, 1, 1], [], []>} : vector<8x32xf32>, vector<32x128xf32>, vector<8x128xf32> -> vector<8x128xf32>
    %95 = arith.addf %93, %94 : vector<8x128xf32>
    %96 = vector.extract_strided_slice %95 {offsets = [0, 0], sizes = [8, 32], strides = [1, 1]} : vector<8x128xf32> to vector<8x32xf32>
    %97 = arith.negf %96 : vector<8x32xf32>
    %98 = math.exp %97 : vector<8x32xf32>
    %cst_22 = arith.constant 1.000000e+00 : f32
    %99 = vector.broadcast %cst_22 : f32 to vector<8x32xf32>
    %100 = arith.addf %99, %98 : vector<8x32xf32>
    %101 = arith.divf %99, %100 : vector<8x32xf32>
    %102 = vector.extract_strided_slice %95 {offsets = [0, 32], sizes = [8, 32], strides = [1, 1]} : vector<8x128xf32> to vector<8x32xf32>
    %103 = arith.negf %102 : vector<8x32xf32>
    %104 = math.exp %103 : vector<8x32xf32>
    %cst_23 = arith.constant 1.000000e+00 : f32
    %105 = vector.broadcast %cst_23 : f32 to vector<8x32xf32>
    %106 = arith.addf %105, %104 : vector<8x32xf32>
    %107 = arith.divf %105, %106 : vector<8x32xf32>
    %108 = vector.extract_strided_slice %95 {offsets = [0, 64], sizes = [8, 32], strides = [1, 1]} : vector<8x128xf32> to vector<8x32xf32>
    %109 = math.tanh %108 : vector<8x32xf32>
    %110 = vector.extract_strided_slice %95 {offsets = [0, 96], sizes = [8, 32], strides = [1, 1]} : vector<8x128xf32> to vector<8x32xf32>
    %111 = arith.negf %110 : vector<8x32xf32>
    %112 = math.exp %111 : vector<8x32xf32>
    %cst_24 = arith.constant 1.000000e+00 : f32
    %113 = vector.broadcast %cst_24 : f32 to vector<8x32xf32>
    %114 = arith.addf %113, %112 : vector<8x32xf32>
    %115 = arith.divf %113, %114 : vector<8x32xf32>
    %116 = arith.mulf %107, %90 : vector<8x32xf32>
    %117 = arith.mulf %101, %109 : vector<8x32xf32>
    %118 = arith.addf %116, %117 : vector<8x32xf32>
    %119 = math.tanh %118 : vector<8x32xf32>
    %120 = arith.mulf %115, %119 : vector<8x32xf32>
    %121 = vector.extract_strided_slice %6 {offsets = [32, 0], sizes = [8, 128], strides = [1, 1]} : vector<64x128xf32> to vector<8x128xf32>
    %cst_25 = arith.constant dense<0.000000e+00> : vector<8x128xf32>
    %122 = tpu.matmul %120, %2, %cst_25 {dimension_numbers = #tpu.dot_dimension_numbers<[1], [0], [0], [1], [0, 0, 1, 1], [], []>} : vector<8x32xf32>, vector<32x128xf32>, vector<8x128xf32> -> vector<8x128xf32>
    %123 = arith.addf %121, %122 : vector<8x128xf32>
    %124 = vector.extract_strided_slice %123 {offsets = [0, 0], sizes = [8, 32], strides = [1, 1]} : vector<8x128xf32> to vector<8x32xf32>
    %125 = arith.negf %124 : vector<8x32xf32>
    %126 = math.exp %125 : vector<8x32xf32>
    %cst_26 = arith.constant 1.000000e+00 : f32
    %127 = vector.broadcast %cst_26 : f32 to vector<8x32xf32>
    %128 = arith.addf %127, %126 : vector<8x32xf32>
    %129 = arith.divf %127, %128 : vector<8x32xf32>
    %130 = vector.extract_strided_slice %123 {offsets = [0, 32], sizes = [8, 32], strides = [1, 1]} : vector<8x128xf32> to vector<8x32xf32>
    %131 = arith.negf %130 : vector<8x32xf32>
    %132 = math.exp %131 : vector<8x32xf32>
    %cst_27 = arith.constant 1.000000e+00 : f32
    %133 = vector.broadcast %cst_27 : f32 to vector<8x32xf32>
    %134 = arith.addf %133, %132 : vector<8x32xf32>
    %135 = arith.divf %133, %134 : vector<8x32xf32>
    %136 = vector.extract_strided_slice %123 {offsets = [0, 64], sizes = [8, 32], strides = [1, 1]} : vector<8x128xf32> to vector<8x32xf32>
    %137 = math.tanh %136 : vector<8x32xf32>
    %138 = vector.extract_strided_slice %123 {offsets = [0, 96], sizes = [8, 32], strides = [1, 1]} : vector<8x128xf32> to vector<8x32xf32>
    %139 = arith.negf %138 : vector<8x32xf32>
    %140 = math.exp %139 : vector<8x32xf32>
    %cst_28 = arith.constant 1.000000e+00 : f32
    %141 = vector.broadcast %cst_28 : f32 to vector<8x32xf32>
    %142 = arith.addf %141, %140 : vector<8x32xf32>
    %143 = arith.divf %141, %142 : vector<8x32xf32>
    %144 = arith.mulf %135, %118 : vector<8x32xf32>
    %145 = arith.mulf %129, %137 : vector<8x32xf32>
    %146 = arith.addf %144, %145 : vector<8x32xf32>
    %147 = math.tanh %146 : vector<8x32xf32>
    %148 = arith.mulf %143, %147 : vector<8x32xf32>
    %149 = vector.extract_strided_slice %6 {offsets = [40, 0], sizes = [8, 128], strides = [1, 1]} : vector<64x128xf32> to vector<8x128xf32>
    %cst_29 = arith.constant dense<0.000000e+00> : vector<8x128xf32>
    %150 = tpu.matmul %148, %2, %cst_29 {dimension_numbers = #tpu.dot_dimension_numbers<[1], [0], [0], [1], [0, 0, 1, 1], [], []>} : vector<8x32xf32>, vector<32x128xf32>, vector<8x128xf32> -> vector<8x128xf32>
    %151 = arith.addf %149, %150 : vector<8x128xf32>
    %152 = vector.extract_strided_slice %151 {offsets = [0, 0], sizes = [8, 32], strides = [1, 1]} : vector<8x128xf32> to vector<8x32xf32>
    %153 = arith.negf %152 : vector<8x32xf32>
    %154 = math.exp %153 : vector<8x32xf32>
    %cst_30 = arith.constant 1.000000e+00 : f32
    %155 = vector.broadcast %cst_30 : f32 to vector<8x32xf32>
    %156 = arith.addf %155, %154 : vector<8x32xf32>
    %157 = arith.divf %155, %156 : vector<8x32xf32>
    %158 = vector.extract_strided_slice %151 {offsets = [0, 32], sizes = [8, 32], strides = [1, 1]} : vector<8x128xf32> to vector<8x32xf32>
    %159 = arith.negf %158 : vector<8x32xf32>
    %160 = math.exp %159 : vector<8x32xf32>
    %cst_31 = arith.constant 1.000000e+00 : f32
    %161 = vector.broadcast %cst_31 : f32 to vector<8x32xf32>
    %162 = arith.addf %161, %160 : vector<8x32xf32>
    %163 = arith.divf %161, %162 : vector<8x32xf32>
    %164 = vector.extract_strided_slice %151 {offsets = [0, 64], sizes = [8, 32], strides = [1, 1]} : vector<8x128xf32> to vector<8x32xf32>
    %165 = math.tanh %164 : vector<8x32xf32>
    %166 = vector.extract_strided_slice %151 {offsets = [0, 96], sizes = [8, 32], strides = [1, 1]} : vector<8x128xf32> to vector<8x32xf32>
    %167 = arith.negf %166 : vector<8x32xf32>
    %168 = math.exp %167 : vector<8x32xf32>
    %cst_32 = arith.constant 1.000000e+00 : f32
    %169 = vector.broadcast %cst_32 : f32 to vector<8x32xf32>
    %170 = arith.addf %169, %168 : vector<8x32xf32>
    %171 = arith.divf %169, %170 : vector<8x32xf32>
    %172 = arith.mulf %163, %146 : vector<8x32xf32>
    %173 = arith.mulf %157, %165 : vector<8x32xf32>
    %174 = arith.addf %172, %173 : vector<8x32xf32>
    %175 = math.tanh %174 : vector<8x32xf32>
    %176 = arith.mulf %171, %175 : vector<8x32xf32>
    %177 = vector.extract_strided_slice %6 {offsets = [48, 0], sizes = [8, 128], strides = [1, 1]} : vector<64x128xf32> to vector<8x128xf32>
    %cst_33 = arith.constant dense<0.000000e+00> : vector<8x128xf32>
    %178 = tpu.matmul %176, %2, %cst_33 {dimension_numbers = #tpu.dot_dimension_numbers<[1], [0], [0], [1], [0, 0, 1, 1], [], []>} : vector<8x32xf32>, vector<32x128xf32>, vector<8x128xf32> -> vector<8x128xf32>
    %179 = arith.addf %177, %178 : vector<8x128xf32>
    %180 = vector.extract_strided_slice %179 {offsets = [0, 0], sizes = [8, 32], strides = [1, 1]} : vector<8x128xf32> to vector<8x32xf32>
    %181 = arith.negf %180 : vector<8x32xf32>
    %182 = math.exp %181 : vector<8x32xf32>
    %cst_34 = arith.constant 1.000000e+00 : f32
    %183 = vector.broadcast %cst_34 : f32 to vector<8x32xf32>
    %184 = arith.addf %183, %182 : vector<8x32xf32>
    %185 = arith.divf %183, %184 : vector<8x32xf32>
    %186 = vector.extract_strided_slice %179 {offsets = [0, 32], sizes = [8, 32], strides = [1, 1]} : vector<8x128xf32> to vector<8x32xf32>
    %187 = arith.negf %186 : vector<8x32xf32>
    %188 = math.exp %187 : vector<8x32xf32>
    %cst_35 = arith.constant 1.000000e+00 : f32
    %189 = vector.broadcast %cst_35 : f32 to vector<8x32xf32>
    %190 = arith.addf %189, %188 : vector<8x32xf32>
    %191 = arith.divf %189, %190 : vector<8x32xf32>
    %192 = vector.extract_strided_slice %179 {offsets = [0, 64], sizes = [8, 32], strides = [1, 1]} : vector<8x128xf32> to vector<8x32xf32>
    %193 = math.tanh %192 : vector<8x32xf32>
    %194 = vector.extract_strided_slice %179 {offsets = [0, 96], sizes = [8, 32], strides = [1, 1]} : vector<8x128xf32> to vector<8x32xf32>
    %195 = arith.negf %194 : vector<8x32xf32>
    %196 = math.exp %195 : vector<8x32xf32>
    %cst_36 = arith.constant 1.000000e+00 : f32
    %197 = vector.broadcast %cst_36 : f32 to vector<8x32xf32>
    %198 = arith.addf %197, %196 : vector<8x32xf32>
    %199 = arith.divf %197, %198 : vector<8x32xf32>
    %200 = arith.mulf %191, %174 : vector<8x32xf32>
    %201 = arith.mulf %185, %193 : vector<8x32xf32>
    %202 = arith.addf %200, %201 : vector<8x32xf32>
    %203 = math.tanh %202 : vector<8x32xf32>
    %204 = arith.mulf %199, %203 : vector<8x32xf32>
    %205 = vector.extract_strided_slice %6 {offsets = [56, 0], sizes = [8, 128], strides = [1, 1]} : vector<64x128xf32> to vector<8x128xf32>
    %cst_37 = arith.constant dense<0.000000e+00> : vector<8x128xf32>
    %206 = tpu.matmul %204, %2, %cst_37 {dimension_numbers = #tpu.dot_dimension_numbers<[1], [0], [0], [1], [0, 0, 1, 1], [], []>} : vector<8x32xf32>, vector<32x128xf32>, vector<8x128xf32> -> vector<8x128xf32>
    %207 = arith.addf %205, %206 : vector<8x128xf32>
    %208 = vector.extract_strided_slice %207 {offsets = [0, 0], sizes = [8, 32], strides = [1, 1]} : vector<8x128xf32> to vector<8x32xf32>
    %209 = arith.negf %208 : vector<8x32xf32>
    %210 = math.exp %209 : vector<8x32xf32>
    %cst_38 = arith.constant 1.000000e+00 : f32
    %211 = vector.broadcast %cst_38 : f32 to vector<8x32xf32>
    %212 = arith.addf %211, %210 : vector<8x32xf32>
    %213 = arith.divf %211, %212 : vector<8x32xf32>
    %214 = vector.extract_strided_slice %207 {offsets = [0, 32], sizes = [8, 32], strides = [1, 1]} : vector<8x128xf32> to vector<8x32xf32>
    %215 = arith.negf %214 : vector<8x32xf32>
    %216 = math.exp %215 : vector<8x32xf32>
    %cst_39 = arith.constant 1.000000e+00 : f32
    %217 = vector.broadcast %cst_39 : f32 to vector<8x32xf32>
    %218 = arith.addf %217, %216 : vector<8x32xf32>
    %219 = arith.divf %217, %218 : vector<8x32xf32>
    %220 = vector.extract_strided_slice %207 {offsets = [0, 64], sizes = [8, 32], strides = [1, 1]} : vector<8x128xf32> to vector<8x32xf32>
    %221 = math.tanh %220 : vector<8x32xf32>
    %222 = vector.extract_strided_slice %207 {offsets = [0, 96], sizes = [8, 32], strides = [1, 1]} : vector<8x128xf32> to vector<8x32xf32>
    %223 = arith.negf %222 : vector<8x32xf32>
    %224 = math.exp %223 : vector<8x32xf32>
    %cst_40 = arith.constant 1.000000e+00 : f32
    %225 = vector.broadcast %cst_40 : f32 to vector<8x32xf32>
    %226 = arith.addf %225, %224 : vector<8x32xf32>
    %227 = arith.divf %225, %226 : vector<8x32xf32>
    %228 = arith.mulf %219, %202 : vector<8x32xf32>
    %229 = arith.mulf %213, %221 : vector<8x32xf32>
    %230 = arith.addf %228, %229 : vector<8x32xf32>
    %231 = math.tanh %230 : vector<8x32xf32>
    %232 = arith.mulf %227, %231 : vector<8x32xf32>
    %233 = tpu.concatenate %36, %64, %92, %120, %148, %176, %204, %232 in 0 : vector<8x32xf32>, vector<8x32xf32>, vector<8x32xf32>, vector<8x32xf32>, vector<8x32xf32>, vector<8x32xf32>, vector<8x32xf32>, vector<8x32xf32> -> vector<64x32xf32>
    %c0_41 = arith.constant 0 : index
    %c0_42 = arith.constant 0 : index
    %234 = vector.load %arg4[%c0_41, %c0_42] : memref<32x128xf32, #tpu.memory_space<vmem>>, vector<32x128xf32>
    %c0_43 = arith.constant 0 : index
    %c0_44 = arith.constant 0 : index
    %235 = vector.load %arg5[%c0_43, %c0_44] : memref<32x128xf32, #tpu.memory_space<vmem>>, vector<32x128xf32>
    %c0_45 = arith.constant 0 : index
    %c0_46 = arith.constant 0 : index
    %236 = vector.load %arg6[%c0_45, %c0_46] : memref<1x128xf32, #tpu.memory_space<vmem>>, vector<1x128xf32>
    %cst_47 = arith.constant dense<0.000000e+00> : vector<64x128xf32>
    %237 = tpu.matmul %233, %234, %cst_47 {dimension_numbers = #tpu.dot_dimension_numbers<[1], [0], [0], [1], [0, 0, 1, 1], [], []>} : vector<64x32xf32>, vector<32x128xf32>, vector<64x128xf32> -> vector<64x128xf32>
    %238 = vector.broadcast %236 : vector<1x128xf32> to vector<64x128xf32>
    %239 = arith.addf %237, %238 : vector<64x128xf32>
    %cst_48 = arith.constant 0.000000e+00 : f32
    %240 = vector.broadcast %cst_48 : f32 to vector<8x32xf32>
    %cst_49 = arith.constant 0.000000e+00 : f32
    %241 = vector.broadcast %cst_49 : f32 to vector<8x32xf32>
    %242 = vector.extract_strided_slice %239 {offsets = [0, 0], sizes = [8, 128], strides = [1, 1]} : vector<64x128xf32> to vector<8x128xf32>
    %cst_50 = arith.constant dense<0.000000e+00> : vector<8x128xf32>
    %243 = tpu.matmul %240, %235, %cst_50 {dimension_numbers = #tpu.dot_dimension_numbers<[1], [0], [0], [1], [0, 0, 1, 1], [], []>} : vector<8x32xf32>, vector<32x128xf32>, vector<8x128xf32> -> vector<8x128xf32>
    %244 = arith.addf %242, %243 : vector<8x128xf32>
    %245 = vector.extract_strided_slice %244 {offsets = [0, 0], sizes = [8, 32], strides = [1, 1]} : vector<8x128xf32> to vector<8x32xf32>
    %246 = arith.negf %245 : vector<8x32xf32>
    %247 = math.exp %246 : vector<8x32xf32>
    %cst_51 = arith.constant 1.000000e+00 : f32
    %248 = vector.broadcast %cst_51 : f32 to vector<8x32xf32>
    %249 = arith.addf %248, %247 : vector<8x32xf32>
    %250 = arith.divf %248, %249 : vector<8x32xf32>
    %251 = vector.extract_strided_slice %244 {offsets = [0, 32], sizes = [8, 32], strides = [1, 1]} : vector<8x128xf32> to vector<8x32xf32>
    %252 = arith.negf %251 : vector<8x32xf32>
    %253 = math.exp %252 : vector<8x32xf32>
    %cst_52 = arith.constant 1.000000e+00 : f32
    %254 = vector.broadcast %cst_52 : f32 to vector<8x32xf32>
    %255 = arith.addf %254, %253 : vector<8x32xf32>
    %256 = arith.divf %254, %255 : vector<8x32xf32>
    %257 = vector.extract_strided_slice %244 {offsets = [0, 64], sizes = [8, 32], strides = [1, 1]} : vector<8x128xf32> to vector<8x32xf32>
    %258 = math.tanh %257 : vector<8x32xf32>
    %259 = vector.extract_strided_slice %244 {offsets = [0, 96], sizes = [8, 32], strides = [1, 1]} : vector<8x128xf32> to vector<8x32xf32>
    %260 = arith.negf %259 : vector<8x32xf32>
    %261 = math.exp %260 : vector<8x32xf32>
    %cst_53 = arith.constant 1.000000e+00 : f32
    %262 = vector.broadcast %cst_53 : f32 to vector<8x32xf32>
    %263 = arith.addf %262, %261 : vector<8x32xf32>
    %264 = arith.divf %262, %263 : vector<8x32xf32>
    %265 = arith.mulf %256, %241 : vector<8x32xf32>
    %266 = arith.mulf %250, %258 : vector<8x32xf32>
    %267 = arith.addf %265, %266 : vector<8x32xf32>
    %268 = math.tanh %267 : vector<8x32xf32>
    %269 = arith.mulf %264, %268 : vector<8x32xf32>
    %270 = vector.extract_strided_slice %239 {offsets = [8, 0], sizes = [8, 128], strides = [1, 1]} : vector<64x128xf32> to vector<8x128xf32>
    %cst_54 = arith.constant dense<0.000000e+00> : vector<8x128xf32>
    %271 = tpu.matmul %269, %235, %cst_54 {dimension_numbers = #tpu.dot_dimension_numbers<[1], [0], [0], [1], [0, 0, 1, 1], [], []>} : vector<8x32xf32>, vector<32x128xf32>, vector<8x128xf32> -> vector<8x128xf32>
    %272 = arith.addf %270, %271 : vector<8x128xf32>
    %273 = vector.extract_strided_slice %272 {offsets = [0, 0], sizes = [8, 32], strides = [1, 1]} : vector<8x128xf32> to vector<8x32xf32>
    %274 = arith.negf %273 : vector<8x32xf32>
    %275 = math.exp %274 : vector<8x32xf32>
    %cst_55 = arith.constant 1.000000e+00 : f32
    %276 = vector.broadcast %cst_55 : f32 to vector<8x32xf32>
    %277 = arith.addf %276, %275 : vector<8x32xf32>
    %278 = arith.divf %276, %277 : vector<8x32xf32>
    %279 = vector.extract_strided_slice %272 {offsets = [0, 32], sizes = [8, 32], strides = [1, 1]} : vector<8x128xf32> to vector<8x32xf32>
    %280 = arith.negf %279 : vector<8x32xf32>
    %281 = math.exp %280 : vector<8x32xf32>
    %cst_56 = arith.constant 1.000000e+00 : f32
    %282 = vector.broadcast %cst_56 : f32 to vector<8x32xf32>
    %283 = arith.addf %282, %281 : vector<8x32xf32>
    %284 = arith.divf %282, %283 : vector<8x32xf32>
    %285 = vector.extract_strided_slice %272 {offsets = [0, 64], sizes = [8, 32], strides = [1, 1]} : vector<8x128xf32> to vector<8x32xf32>
    %286 = math.tanh %285 : vector<8x32xf32>
    %287 = vector.extract_strided_slice %272 {offsets = [0, 96], sizes = [8, 32], strides = [1, 1]} : vector<8x128xf32> to vector<8x32xf32>
    %288 = arith.negf %287 : vector<8x32xf32>
    %289 = math.exp %288 : vector<8x32xf32>
    %cst_57 = arith.constant 1.000000e+00 : f32
    %290 = vector.broadcast %cst_57 : f32 to vector<8x32xf32>
    %291 = arith.addf %290, %289 : vector<8x32xf32>
    %292 = arith.divf %290, %291 : vector<8x32xf32>
    %293 = arith.mulf %284, %267 : vector<8x32xf32>
    %294 = arith.mulf %278, %286 : vector<8x32xf32>
    %295 = arith.addf %293, %294 : vector<8x32xf32>
    %296 = math.tanh %295 : vector<8x32xf32>
    %297 = arith.mulf %292, %296 : vector<8x32xf32>
    %298 = vector.extract_strided_slice %239 {offsets = [16, 0], sizes = [8, 128], strides = [1, 1]} : vector<64x128xf32> to vector<8x128xf32>
    %cst_58 = arith.constant dense<0.000000e+00> : vector<8x128xf32>
    %299 = tpu.matmul %297, %235, %cst_58 {dimension_numbers = #tpu.dot_dimension_numbers<[1], [0], [0], [1], [0, 0, 1, 1], [], []>} : vector<8x32xf32>, vector<32x128xf32>, vector<8x128xf32> -> vector<8x128xf32>
    %300 = arith.addf %298, %299 : vector<8x128xf32>
    %301 = vector.extract_strided_slice %300 {offsets = [0, 0], sizes = [8, 32], strides = [1, 1]} : vector<8x128xf32> to vector<8x32xf32>
    %302 = arith.negf %301 : vector<8x32xf32>
    %303 = math.exp %302 : vector<8x32xf32>
    %cst_59 = arith.constant 1.000000e+00 : f32
    %304 = vector.broadcast %cst_59 : f32 to vector<8x32xf32>
    %305 = arith.addf %304, %303 : vector<8x32xf32>
    %306 = arith.divf %304, %305 : vector<8x32xf32>
    %307 = vector.extract_strided_slice %300 {offsets = [0, 32], sizes = [8, 32], strides = [1, 1]} : vector<8x128xf32> to vector<8x32xf32>
    %308 = arith.negf %307 : vector<8x32xf32>
    %309 = math.exp %308 : vector<8x32xf32>
    %cst_60 = arith.constant 1.000000e+00 : f32
    %310 = vector.broadcast %cst_60 : f32 to vector<8x32xf32>
    %311 = arith.addf %310, %309 : vector<8x32xf32>
    %312 = arith.divf %310, %311 : vector<8x32xf32>
    %313 = vector.extract_strided_slice %300 {offsets = [0, 64], sizes = [8, 32], strides = [1, 1]} : vector<8x128xf32> to vector<8x32xf32>
    %314 = math.tanh %313 : vector<8x32xf32>
    %315 = vector.extract_strided_slice %300 {offsets = [0, 96], sizes = [8, 32], strides = [1, 1]} : vector<8x128xf32> to vector<8x32xf32>
    %316 = arith.negf %315 : vector<8x32xf32>
    %317 = math.exp %316 : vector<8x32xf32>
    %cst_61 = arith.constant 1.000000e+00 : f32
    %318 = vector.broadcast %cst_61 : f32 to vector<8x32xf32>
    %319 = arith.addf %318, %317 : vector<8x32xf32>
    %320 = arith.divf %318, %319 : vector<8x32xf32>
    %321 = arith.mulf %312, %295 : vector<8x32xf32>
    %322 = arith.mulf %306, %314 : vector<8x32xf32>
    %323 = arith.addf %321, %322 : vector<8x32xf32>
    %324 = math.tanh %323 : vector<8x32xf32>
    %325 = arith.mulf %320, %324 : vector<8x32xf32>
    %326 = vector.extract_strided_slice %239 {offsets = [24, 0], sizes = [8, 128], strides = [1, 1]} : vector<64x128xf32> to vector<8x128xf32>
    %cst_62 = arith.constant dense<0.000000e+00> : vector<8x128xf32>
    %327 = tpu.matmul %325, %235, %cst_62 {dimension_numbers = #tpu.dot_dimension_numbers<[1], [0], [0], [1], [0, 0, 1, 1], [], []>} : vector<8x32xf32>, vector<32x128xf32>, vector<8x128xf32> -> vector<8x128xf32>
    %328 = arith.addf %326, %327 : vector<8x128xf32>
    %329 = vector.extract_strided_slice %328 {offsets = [0, 0], sizes = [8, 32], strides = [1, 1]} : vector<8x128xf32> to vector<8x32xf32>
    %330 = arith.negf %329 : vector<8x32xf32>
    %331 = math.exp %330 : vector<8x32xf32>
    %cst_63 = arith.constant 1.000000e+00 : f32
    %332 = vector.broadcast %cst_63 : f32 to vector<8x32xf32>
    %333 = arith.addf %332, %331 : vector<8x32xf32>
    %334 = arith.divf %332, %333 : vector<8x32xf32>
    %335 = vector.extract_strided_slice %328 {offsets = [0, 32], sizes = [8, 32], strides = [1, 1]} : vector<8x128xf32> to vector<8x32xf32>
    %336 = arith.negf %335 : vector<8x32xf32>
    %337 = math.exp %336 : vector<8x32xf32>
    %cst_64 = arith.constant 1.000000e+00 : f32
    %338 = vector.broadcast %cst_64 : f32 to vector<8x32xf32>
    %339 = arith.addf %338, %337 : vector<8x32xf32>
    %340 = arith.divf %338, %339 : vector<8x32xf32>
    %341 = vector.extract_strided_slice %328 {offsets = [0, 64], sizes = [8, 32], strides = [1, 1]} : vector<8x128xf32> to vector<8x32xf32>
    %342 = math.tanh %341 : vector<8x32xf32>
    %343 = vector.extract_strided_slice %328 {offsets = [0, 96], sizes = [8, 32], strides = [1, 1]} : vector<8x128xf32> to vector<8x32xf32>
    %344 = arith.negf %343 : vector<8x32xf32>
    %345 = math.exp %344 : vector<8x32xf32>
    %cst_65 = arith.constant 1.000000e+00 : f32
    %346 = vector.broadcast %cst_65 : f32 to vector<8x32xf32>
    %347 = arith.addf %346, %345 : vector<8x32xf32>
    %348 = arith.divf %346, %347 : vector<8x32xf32>
    %349 = arith.mulf %340, %323 : vector<8x32xf32>
    %350 = arith.mulf %334, %342 : vector<8x32xf32>
    %351 = arith.addf %349, %350 : vector<8x32xf32>
    %352 = math.tanh %351 : vector<8x32xf32>
    %353 = arith.mulf %348, %352 : vector<8x32xf32>
    %354 = vector.extract_strided_slice %239 {offsets = [32, 0], sizes = [8, 128], strides = [1, 1]} : vector<64x128xf32> to vector<8x128xf32>
    %cst_66 = arith.constant dense<0.000000e+00> : vector<8x128xf32>
    %355 = tpu.matmul %353, %235, %cst_66 {dimension_numbers = #tpu.dot_dimension_numbers<[1], [0], [0], [1], [0, 0, 1, 1], [], []>} : vector<8x32xf32>, vector<32x128xf32>, vector<8x128xf32> -> vector<8x128xf32>
    %356 = arith.addf %354, %355 : vector<8x128xf32>
    %357 = vector.extract_strided_slice %356 {offsets = [0, 0], sizes = [8, 32], strides = [1, 1]} : vector<8x128xf32> to vector<8x32xf32>
    %358 = arith.negf %357 : vector<8x32xf32>
    %359 = math.exp %358 : vector<8x32xf32>
    %cst_67 = arith.constant 1.000000e+00 : f32
    %360 = vector.broadcast %cst_67 : f32 to vector<8x32xf32>
    %361 = arith.addf %360, %359 : vector<8x32xf32>
    %362 = arith.divf %360, %361 : vector<8x32xf32>
    %363 = vector.extract_strided_slice %356 {offsets = [0, 32], sizes = [8, 32], strides = [1, 1]} : vector<8x128xf32> to vector<8x32xf32>
    %364 = arith.negf %363 : vector<8x32xf32>
    %365 = math.exp %364 : vector<8x32xf32>
    %cst_68 = arith.constant 1.000000e+00 : f32
    %366 = vector.broadcast %cst_68 : f32 to vector<8x32xf32>
    %367 = arith.addf %366, %365 : vector<8x32xf32>
    %368 = arith.divf %366, %367 : vector<8x32xf32>
    %369 = vector.extract_strided_slice %356 {offsets = [0, 64], sizes = [8, 32], strides = [1, 1]} : vector<8x128xf32> to vector<8x32xf32>
    %370 = math.tanh %369 : vector<8x32xf32>
    %371 = vector.extract_strided_slice %356 {offsets = [0, 96], sizes = [8, 32], strides = [1, 1]} : vector<8x128xf32> to vector<8x32xf32>
    %372 = arith.negf %371 : vector<8x32xf32>
    %373 = math.exp %372 : vector<8x32xf32>
    %cst_69 = arith.constant 1.000000e+00 : f32
    %374 = vector.broadcast %cst_69 : f32 to vector<8x32xf32>
    %375 = arith.addf %374, %373 : vector<8x32xf32>
    %376 = arith.divf %374, %375 : vector<8x32xf32>
    %377 = arith.mulf %368, %351 : vector<8x32xf32>
    %378 = arith.mulf %362, %370 : vector<8x32xf32>
    %379 = arith.addf %377, %378 : vector<8x32xf32>
    %380 = math.tanh %379 : vector<8x32xf32>
    %381 = arith.mulf %376, %380 : vector<8x32xf32>
    %382 = vector.extract_strided_slice %239 {offsets = [40, 0], sizes = [8, 128], strides = [1, 1]} : vector<64x128xf32> to vector<8x128xf32>
    %cst_70 = arith.constant dense<0.000000e+00> : vector<8x128xf32>
    %383 = tpu.matmul %381, %235, %cst_70 {dimension_numbers = #tpu.dot_dimension_numbers<[1], [0], [0], [1], [0, 0, 1, 1], [], []>} : vector<8x32xf32>, vector<32x128xf32>, vector<8x128xf32> -> vector<8x128xf32>
    %384 = arith.addf %382, %383 : vector<8x128xf32>
    %385 = vector.extract_strided_slice %384 {offsets = [0, 0], sizes = [8, 32], strides = [1, 1]} : vector<8x128xf32> to vector<8x32xf32>
    %386 = arith.negf %385 : vector<8x32xf32>
    %387 = math.exp %386 : vector<8x32xf32>
    %cst_71 = arith.constant 1.000000e+00 : f32
    %388 = vector.broadcast %cst_71 : f32 to vector<8x32xf32>
    %389 = arith.addf %388, %387 : vector<8x32xf32>
    %390 = arith.divf %388, %389 : vector<8x32xf32>
    %391 = vector.extract_strided_slice %384 {offsets = [0, 32], sizes = [8, 32], strides = [1, 1]} : vector<8x128xf32> to vector<8x32xf32>
    %392 = arith.negf %391 : vector<8x32xf32>
    %393 = math.exp %392 : vector<8x32xf32>
    %cst_72 = arith.constant 1.000000e+00 : f32
    %394 = vector.broadcast %cst_72 : f32 to vector<8x32xf32>
    %395 = arith.addf %394, %393 : vector<8x32xf32>
    %396 = arith.divf %394, %395 : vector<8x32xf32>
    %397 = vector.extract_strided_slice %384 {offsets = [0, 64], sizes = [8, 32], strides = [1, 1]} : vector<8x128xf32> to vector<8x32xf32>
    %398 = math.tanh %397 : vector<8x32xf32>
    %399 = vector.extract_strided_slice %384 {offsets = [0, 96], sizes = [8, 32], strides = [1, 1]} : vector<8x128xf32> to vector<8x32xf32>
    %400 = arith.negf %399 : vector<8x32xf32>
    %401 = math.exp %400 : vector<8x32xf32>
    %cst_73 = arith.constant 1.000000e+00 : f32
    %402 = vector.broadcast %cst_73 : f32 to vector<8x32xf32>
    %403 = arith.addf %402, %401 : vector<8x32xf32>
    %404 = arith.divf %402, %403 : vector<8x32xf32>
    %405 = arith.mulf %396, %379 : vector<8x32xf32>
    %406 = arith.mulf %390, %398 : vector<8x32xf32>
    %407 = arith.addf %405, %406 : vector<8x32xf32>
    %408 = math.tanh %407 : vector<8x32xf32>
    %409 = arith.mulf %404, %408 : vector<8x32xf32>
    %410 = vector.extract_strided_slice %239 {offsets = [48, 0], sizes = [8, 128], strides = [1, 1]} : vector<64x128xf32> to vector<8x128xf32>
    %cst_74 = arith.constant dense<0.000000e+00> : vector<8x128xf32>
    %411 = tpu.matmul %409, %235, %cst_74 {dimension_numbers = #tpu.dot_dimension_numbers<[1], [0], [0], [1], [0, 0, 1, 1], [], []>} : vector<8x32xf32>, vector<32x128xf32>, vector<8x128xf32> -> vector<8x128xf32>
    %412 = arith.addf %410, %411 : vector<8x128xf32>
    %413 = vector.extract_strided_slice %412 {offsets = [0, 0], sizes = [8, 32], strides = [1, 1]} : vector<8x128xf32> to vector<8x32xf32>
    %414 = arith.negf %413 : vector<8x32xf32>
    %415 = math.exp %414 : vector<8x32xf32>
    %cst_75 = arith.constant 1.000000e+00 : f32
    %416 = vector.broadcast %cst_75 : f32 to vector<8x32xf32>
    %417 = arith.addf %416, %415 : vector<8x32xf32>
    %418 = arith.divf %416, %417 : vector<8x32xf32>
    %419 = vector.extract_strided_slice %412 {offsets = [0, 32], sizes = [8, 32], strides = [1, 1]} : vector<8x128xf32> to vector<8x32xf32>
    %420 = arith.negf %419 : vector<8x32xf32>
    %421 = math.exp %420 : vector<8x32xf32>
    %cst_76 = arith.constant 1.000000e+00 : f32
    %422 = vector.broadcast %cst_76 : f32 to vector<8x32xf32>
    %423 = arith.addf %422, %421 : vector<8x32xf32>
    %424 = arith.divf %422, %423 : vector<8x32xf32>
    %425 = vector.extract_strided_slice %412 {offsets = [0, 64], sizes = [8, 32], strides = [1, 1]} : vector<8x128xf32> to vector<8x32xf32>
    %426 = math.tanh %425 : vector<8x32xf32>
    %427 = vector.extract_strided_slice %412 {offsets = [0, 96], sizes = [8, 32], strides = [1, 1]} : vector<8x128xf32> to vector<8x32xf32>
    %428 = arith.negf %427 : vector<8x32xf32>
    %429 = math.exp %428 : vector<8x32xf32>
    %cst_77 = arith.constant 1.000000e+00 : f32
    %430 = vector.broadcast %cst_77 : f32 to vector<8x32xf32>
    %431 = arith.addf %430, %429 : vector<8x32xf32>
    %432 = arith.divf %430, %431 : vector<8x32xf32>
    %433 = arith.mulf %424, %407 : vector<8x32xf32>
    %434 = arith.mulf %418, %426 : vector<8x32xf32>
    %435 = arith.addf %433, %434 : vector<8x32xf32>
    %436 = math.tanh %435 : vector<8x32xf32>
    %437 = arith.mulf %432, %436 : vector<8x32xf32>
    %438 = vector.extract_strided_slice %239 {offsets = [56, 0], sizes = [8, 128], strides = [1, 1]} : vector<64x128xf32> to vector<8x128xf32>
    %cst_78 = arith.constant dense<0.000000e+00> : vector<8x128xf32>
    %439 = tpu.matmul %437, %235, %cst_78 {dimension_numbers = #tpu.dot_dimension_numbers<[1], [0], [0], [1], [0, 0, 1, 1], [], []>} : vector<8x32xf32>, vector<32x128xf32>, vector<8x128xf32> -> vector<8x128xf32>
    %440 = arith.addf %438, %439 : vector<8x128xf32>
    %441 = vector.extract_strided_slice %440 {offsets = [0, 0], sizes = [8, 32], strides = [1, 1]} : vector<8x128xf32> to vector<8x32xf32>
    %442 = arith.negf %441 : vector<8x32xf32>
    %443 = math.exp %442 : vector<8x32xf32>
    %cst_79 = arith.constant 1.000000e+00 : f32
    %444 = vector.broadcast %cst_79 : f32 to vector<8x32xf32>
    %445 = arith.addf %444, %443 : vector<8x32xf32>
    %446 = arith.divf %444, %445 : vector<8x32xf32>
    %447 = vector.extract_strided_slice %440 {offsets = [0, 32], sizes = [8, 32], strides = [1, 1]} : vector<8x128xf32> to vector<8x32xf32>
    %448 = arith.negf %447 : vector<8x32xf32>
    %449 = math.exp %448 : vector<8x32xf32>
    %cst_80 = arith.constant 1.000000e+00 : f32
    %450 = vector.broadcast %cst_80 : f32 to vector<8x32xf32>
    %451 = arith.addf %450, %449 : vector<8x32xf32>
    %452 = arith.divf %450, %451 : vector<8x32xf32>
    %453 = vector.extract_strided_slice %440 {offsets = [0, 64], sizes = [8, 32], strides = [1, 1]} : vector<8x128xf32> to vector<8x32xf32>
    %454 = math.tanh %453 : vector<8x32xf32>
    %455 = vector.extract_strided_slice %440 {offsets = [0, 96], sizes = [8, 32], strides = [1, 1]} : vector<8x128xf32> to vector<8x32xf32>
    %456 = arith.negf %455 : vector<8x32xf32>
    %457 = math.exp %456 : vector<8x32xf32>
    %cst_81 = arith.constant 1.000000e+00 : f32
    %458 = vector.broadcast %cst_81 : f32 to vector<8x32xf32>
    %459 = arith.addf %458, %457 : vector<8x32xf32>
    %460 = arith.divf %458, %459 : vector<8x32xf32>
    %461 = arith.mulf %452, %435 : vector<8x32xf32>
    %462 = arith.mulf %446, %454 : vector<8x32xf32>
    %463 = arith.addf %461, %462 : vector<8x32xf32>
    %464 = math.tanh %463 : vector<8x32xf32>
    %465 = arith.mulf %460, %464 : vector<8x32xf32>
    %c0_82 = arith.constant 0 : index
    %c0_83 = arith.constant 0 : index
    %466 = vector.load %arg7[%c0_82, %c0_83] : memref<32x16xf32, #tpu.memory_space<vmem>>, vector<32x16xf32>
    %cst_84 = arith.constant dense<0.000000e+00> : vector<8x16xf32>
    %467 = tpu.matmul %465, %466, %cst_84 {dimension_numbers = #tpu.dot_dimension_numbers<[1], [0], [0], [1], [0, 0, 1, 1], [], []>} : vector<8x32xf32>, vector<32x16xf32>, vector<8x16xf32> -> vector<8x16xf32>
    %c0_85 = arith.constant 0 : index
    %c0_86 = arith.constant 0 : index
    %468 = vector.load %arg8[%c0_85, %c0_86] : memref<1x16xf32, #tpu.memory_space<vmem>>, vector<1x16xf32>
    %469 = vector.broadcast %468 : vector<1x16xf32> to vector<8x16xf32>
    %470 = arith.addf %467, %469 : vector<8x16xf32>
    %cst_87 = arith.constant 0.000000e+00 : f32
    %471 = vector.broadcast %cst_87 : f32 to vector<8x16xf32>
    %472 = arith.maximumf %470, %471 : vector<8x16xf32>
    %c0_88 = arith.constant 0 : index
    %c0_89 = arith.constant 0 : index
    %473 = vector.load %arg9[%c0_88, %c0_89] : memref<16x16xf32, #tpu.memory_space<vmem>>, vector<16x16xf32>
    %cst_90 = arith.constant dense<0.000000e+00> : vector<8x16xf32>
    %474 = tpu.matmul %472, %473, %cst_90 {dimension_numbers = #tpu.dot_dimension_numbers<[1], [0], [0], [1], [0, 0, 1, 1], [], []>} : vector<8x16xf32>, vector<16x16xf32>, vector<8x16xf32> -> vector<8x16xf32>
    %c0_91 = arith.constant 0 : index
    %c0_92 = arith.constant 0 : index
    %475 = vector.load %arg10[%c0_91, %c0_92] : memref<1x16xf32, #tpu.memory_space<vmem>>, vector<1x16xf32>
    %476 = vector.broadcast %475 : vector<1x16xf32> to vector<8x16xf32>
    %477 = arith.addf %474, %476 : vector<8x16xf32>
    %cst_93 = arith.constant 0.000000e+00 : f32
    %478 = vector.broadcast %cst_93 : f32 to vector<8x16xf32>
    %479 = arith.maximumf %477, %478 : vector<8x16xf32>
    %c0_94 = arith.constant 0 : index
    %c0_95 = arith.constant 0 : index
    %480 = vector.load %arg11[%c0_94, %c0_95] : memref<16x8xf32, #tpu.memory_space<vmem>>, vector<16x8xf32>
    %cst_96 = arith.constant dense<0.000000e+00> : vector<8x8xf32>
    %481 = tpu.matmul %479, %480, %cst_96 {dimension_numbers = #tpu.dot_dimension_numbers<[1], [0], [0], [1], [0, 0, 1, 1], [], []>} : vector<8x16xf32>, vector<16x8xf32>, vector<8x8xf32> -> vector<8x8xf32>
    %c0_97 = arith.constant 0 : index
    %c0_98 = arith.constant 0 : index
    %482 = vector.load %arg12[%c0_97, %c0_98] : memref<1x8xf32, #tpu.memory_space<vmem>>, vector<1x8xf32>
    %483 = vector.broadcast %482 : vector<1x8xf32> to vector<8x8xf32>
    %484 = arith.addf %481, %483 : vector<8x8xf32>
    %c0_99 = arith.constant 0 : index
    %c0_100 = arith.constant 0 : index
    %485 = vector.load %arg13[%c0_99, %c0_100] : memref<8x8xf32, #tpu.memory_space<vmem>>, vector<8x8xf32>
    tpu.vector_store %arg13[%c0_99, %c0_100], %484 {strides = array<i32>} : memref<8x8xf32, #tpu.memory_space<vmem>>, vector<8x8xf32>,
    return
  }
}

</mosaic_0001>

<bundles_post_ra>
// kernel: rnn_forward.1
= control target key start
LH: loop header
LB: loop body
LE: loop exit
PB: predicated region body
PF: predicated region fallthrough
CT: control target
= control target key end

     0   :  { %vm62_vm0 = vcmask 130048   ;;  %v1473_v7 = vmov 0.0   ;;  %s1474_s22 = smov 64   ;;  %s1475_s23 = smov 32   ;;  %vm128_vm5 = vcmask 261120   ;;  %s1882_s2 = inlined_call_operand.vmem [shape: f32[32,128], index: 2, kind: input, shape index: {}]   ;;  %s1883_s1 = inlined_call_operand.vmem [shape: f32[16,128], index: 1, kind: input, shape index: {}]   ;;  %s1884_s0 = inlined_call_operand.vmem [shape: f32[64,16], index: 0, kind: input, shape index: {}]   ;;  %s1885_s3 = inlined_call_operand.vmem [shape: f32[1,128], index: 3, kind: input, shape index: {}]   ;;  %s1886_s4 = inlined_call_operand.vmem [shape: f32[32,128], index: 4, kind: input, shape index: {}]   ;;  %s1887_s6 = inlined_call_operand.vmem [shape: f32[1,128], index: 6, kind: input, shape index: {}]   ;;  %s1888_s5 = inlined_call_operand.vmem [shape: f32[32,128], index: 5, kind: input, shape index: {}]   ;;  %s1889_s7 = inlined_call_operand.vmem [shape: f32[32,16], index: 7, kind: input, shape index: {}]   ;;  %s1890_s8 = inlined_call_operand.vmem [shape: f32[1,16], index: 8, kind: input, shape index: {}]   ;;  %s1891_s9 = inlined_call_operand.vmem [shape: f32[16,16], index: 9, kind: input, shape index: {}]   ;;  %s1892_s10 = inlined_call_operand.vmem [shape: f32[1,16], index: 10, kind: input, shape index: {}]   ;;  %s1893_s11 = inlined_call_operand.vmem [shape: f32[16,8], index: 11, kind: input, shape index: {}]   ;;  %s1894_s12 = inlined_call_operand.vmem [shape: f32[1,8], index: 12, kind: input, shape index: {}]   ;;  %s1895_s13 = inlined_call_operand.vmem [shape: f32[8,8], index: 13, kind: output, shape index: {}]  }
   0x1   :  { %v1549_v0 = vld [vmem:[%s1882_s2 + $0x18] sm:$0xff]  ;;  %v53_v1 = vld [vmem:[%s1883_s1 + $0x8] sm:$0xff]  ;;  %v1557_v2 = vld [vmem:[%s1882_s2 + $0x10] sm:$0xff] }
   0x2   :  { %144 = vmatpush.msra.mxu1 %v1549_v0  ;;  %101 = vmatpush.msra.mxu0 %v53_v1  ;;  %v52_v3 = vld [vmem:[%s1883_s1] sm:$0xff]  ;;  %v1569_v5 = vld [vmem:[%s1882_s2 + $0x8] sm:$0xff]  ;;  %v46_v61 = vld [vmem:[%s1884_s0 + $0x10] sm:$0xff] }
   0x3   :  { %v44_v4 = vld [vmem:[%s1884_s0] sm:$0xff]  ;;  %207 = vmatpush.msra.mxu2 %v1549_v0  ;;  %459 = vmatpush.msra.mxu3 %v1549_v0  ;;  %v45_v35 = vld [vmem:[%s1884_s0 + $0x8] sm:$0xff] }
   0x4   :  { %145 = vmatpush.msra.mxu1 %v1557_v2  ;;  %102 = vmatpush.msra.mxu0 %v52_v3  ;;  %v1578_v6 = vld [vmem:[%s1882_s2] sm:$0xff] }
   0x5   :  { %1287 = vmatmul.msk.f32.vlgmr.msra.gmra.mxu0 %vm62_vm0, %v44_v4  ;;  %208 = vmatpush.msra.mxu2 %v1557_v2  ;;  %v1604_v8 = vld [vmem:[%s1885_s3] ss:$0 sm:$0xff] }
   0x6   :  { %146 = vmatpush.msra.mxu1 %v1569_v5  ;;  %460 = vmatpush.msra.mxu3 %v1557_v2 }
   0x7   :  { %209 = vmatpush.msra.mxu2 %v1569_v5 }
   0x8   :  { %147 = vmatpush.msra.mxu1 %v1578_v6  ;;  %461 = vmatpush.msra.mxu3 %v1569_v5 }
   0x9   :  { %148 = vmatmul.f32.vlgmr.msra.gmra.mxu1 %v1473_v7  ;;  %210 = vmatpush.msra.mxu2 %v1578_v6 }
   0xa   :  { %270 = vmatpush.msrb.mxu1 %v1549_v0  ;;  %462 = vmatpush.msra.mxu3 %v1578_v6 }
   0xb   :  { %396 = vmatpush.msrb.mxu2 %v1549_v0 }
   0xc   :  { %271 = vmatpush.msrb.mxu1 %v1557_v2 }
   0xd   :  { %397 = vmatpush.msrb.mxu2 %v1557_v2  ;;  %1288 = vmatmul.msk.f32.gmra.mxu0 %vm62_vm0, %v45_v35 }
   0xe   :  { %272 = vmatpush.msrb.mxu1 %v1569_v5 }
   0xf   :  { %398 = vmatpush.msrb.mxu2 %v1569_v5 }
  0x10   :  { %273 = vmatpush.msrb.mxu1 %v1578_v6 }
  0x11   :  { %399 = vmatpush.msrb.mxu2 %v1578_v6 }
  0x12   :  { %333 = vmatpush.msra.mxu1 %v1549_v0 }
  0x14   :  { %334 = vmatpush.msra.mxu1 %v1557_v2 }
  0x15   :  { %1289 = vmatmul.msk.f32.gmra.mxu0 %vm62_vm0, %v46_v61 }
  0x16   :  { %335 = vmatpush.msra.mxu1 %v1569_v5 }
  0x18   :  { %336 = vmatpush.msra.mxu1 %v1578_v6 }
  0x82   :  { %v104_v9 = vpop.f32.mrf.mxu0 }
  0x83   :  { %v105_v10 = vadd.f32 %v1604_v8, %v104_v9 }
  0x86   :  { %v149_v11 = vpop.f32.mrf.mxu1 }
  0x87   :  { %v152_v12 = vadd.f32 %v149_v11, %v105_v10 }
  0x89   :  { %1344 = vtanh.f32 %v152_v12  ;;  %v1295_v14 = vmul.f32 -1.442695, %v152_v12 }
  0x8a   :  { %v107_v37 = vpop.f32.mrf.mxu0 }
  0x8b   :  { %1346 = vpow2.f32 %v1295_v14  ;;  %v108_v38 = vadd.f32 %v1604_v8, %v107_v37 }
  0x8f   :  { %v1345_v13 = vpop.eup %1344 }
  0x90   :  { %175 = vrot.lane.b32.xlu0 %v1345_v13, %s1474_s22 }
  0x91   :  { %v1347_v15 = vpop.eup %1346 }
  0x92   :  { %v156_v16 = vadd.f32 1.0, %v1347_v15  ;;  %v110_v3 = vpop.f32.mrf.mxu0 }
  0x93   :  { %v111_v4 = vadd.f32 %v1604_v8, %v110_v3 }
  0x94   :  { %1348 = vrcp.f32 %v156_v16  ;;  %v168_v22 = vand.u32 2147483648, %v156_v16  ;;  %vm162_vm2 = vweird.f32 %v156_v16  ;;  %v166_v23 = vand.u32 2147483647, %v156_v16 }
  0x96   :  { %v169_v25 = vor.u32 1.1754944e-38, %v168_v22  ;;  %vm167_vm4 = vcmp.eq.f32.partialorder %v166_v23, 8.507059e+37 }
  0x9a   :  { %v1349_v17 = vpop.eup %1348 }
  0x9b   :  { %v158_v18 = vmul.f32 %v1349_v17, %v156_v16  ;;  %vm163_vm1 = vweird.f32 %v1349_v17 }
  0x9c   :  { %vm164_vm3 = vmor %vm162_vm2, %vm163_vm1 }
  0x9d   :  { %v159_v19 = vsub.f32 1.0, %v158_v18 }
  0x9f   :  { %v160_v20 = vmul.f32 %v1349_v17, %v159_v19 }
  0xa1   :  { %v161_v21 = vadd.f32 %v1349_v17, %v160_v20 }
  0xa3   :  { %v165_v24 = vsel %vm164_vm3, %v1349_v17, %v161_v21 }
  0xa4   :  { %v170_v27 = vsel %vm167_vm4, %v169_v25, %v165_v24 }
  0xa5   :  { %v173_v29 = vmul.f32 0.0, %v170_v27 }
 0x102   :  { %v176_v26 = vpop.permute.xlu0 %175 }
 0x103   :  { %v178_v28 = vmul.f32 %v176_v26, %v170_v27 }
 0x105   :  { %180 = vrot.lane.b32.xlu0 %v178_v28, %s1475_s23 }
 0x177   :  { %v181_v30 = vpop.permute.xlu0 %180 }
 0x178   :  { %v183_v31 = vadd.f32 %v181_v30, %v173_v29 }
 0x17a   :  { %1350 = vtanh.f32 %v183_v31 }
 0x180   :  { %v1351_v32 = vpop.eup %1350 }
 0x181   :  { %186 = vrot.lane.b32.xlu1 %v1351_v32, %s1474_s22 }
 0x1f3   :  { %v187_v33 = vpop.permute.xlu1 %186 }
 0x1f4   :  { %v189_v34 = vmul.f32 %v187_v33, %v170_v27  ;;  %v47_v27 = vld [vmem:[%s1884_s0 + $0x18] sm:$0xff] }
 0x1f5   :  { %1290 = vmatmul.msk.f32.gmra.mxu0 %vm62_vm0, %v47_v27  ;;  %v49_v27 = vld [vmem:[%s1884_s0 + $0x28] sm:$0xff] }
 0x1f6   :  { %191 = vrot.lane.b32.xlu1 %v189_v34, %s1475_s23 }
 0x268   :  { %v1615_v36 = vpop.permute.xlu1 %191 }
 0x269   :  { %1296 = vmatmul.msk.f32.vlgmr.msra.gmra.mxu2 %vm128_vm5, %v1615_v36 }
 0x26a   :  { %585 = vmatpush.msra.mxu2 %v1549_v0 }
 0x26c   :  { %586 = vmatpush.msra.mxu2 %v1557_v2 }
 0x26e   :  { %587 = vmatpush.msra.mxu2 %v1569_v5 }
 0x270   :  { %588 = vmatpush.msra.mxu2 %v1578_v6 }
 0x2ec   :  { %v212_v39 = vpop.f32.mrf.mxu2 }
 0x2ed   :  { %v215_v40 = vadd.f32 %v212_v39, %v108_v38 }
 0x2ef   :  { %1352 = vtanh.f32 %v215_v40  ;;  %v1297_v42 = vmul.f32 -1.442695, %v215_v40 }
 0x2f1   :  { %1354 = vpow2.f32 %v1297_v42 }
 0x2f5   :  { %v1353_v41 = vpop.eup %1352 }
 0x2f6   :  { %238 = vrot.lane.b32.xlu2 %v1353_v41, %s1474_s22 }
 0x2f7   :  { %v1355_v43 = vpop.eup %1354 }
 0x2f8   :  { %v219_v44 = vadd.f32 1.0, %v1355_v43 }
 0x2fa   :  { %1356 = vrcp.f32 %v219_v44  ;;  %v231_v50 = vand.u32 2147483648, %v219_v44  ;;  %vm225_vm7 = vweird.f32 %v219_v44  ;;  %v229_v51 = vand.u32 2147483647, %v219_v44 }
 0x2fc   :  { %v232_v53 = vor.u32 1.1754944e-38, %v231_v50  ;;  %vm230_vm9 = vcmp.eq.f32.partialorder %v229_v51, 8.507059e+37 }
 0x300   :  { %v1357_v45 = vpop.eup %1356 }
 0x301   :  { %v221_v46 = vmul.f32 %v1357_v45, %v219_v44  ;;  %vm226_vm6 = vweird.f32 %v1357_v45 }
 0x302   :  { %vm227_vm8 = vmor %vm225_vm7, %vm226_vm6 }
 0x303   :  { %v222_v47 = vsub.f32 1.0, %v221_v46 }
 0x305   :  { %v223_v48 = vmul.f32 %v1357_v45, %v222_v47 }
 0x307   :  { %v224_v49 = vadd.f32 %v1357_v45, %v223_v48 }
 0x309   :  { %v228_v52 = vsel %vm227_vm8, %v1357_v45, %v224_v49 }
 0x30a   :  { %v233_v55 = vsel %vm230_vm9, %v232_v53, %v228_v52 }
 0x30b   :  { %v236_v57 = vmul.f32 %v233_v55, %v183_v31  ;;  %v113_v31 = vpop.f32.mrf.mxu0 }
 0x30c   :  { %v114_v32 = vadd.f32 %v1604_v8, %v113_v31 }
 0x350   :  { %v239_v54 = vpop.permute.xlu2 %238 }
 0x351   :  { %v241_v56 = vmul.f32 %v239_v54, %v233_v55 }
 0x353   :  { %243 = vrot.lane.b32.xlu2 %v241_v56, %s1475_s23 }
 0x3ad   :  { %v244_v58 = vpop.permute.xlu2 %243 }
 0x3ae   :  { %v246_v59 = vadd.f32 %v244_v58, %v236_v57  ;;  %v48_v58 = vld [vmem:[%s1884_s0 + $0x20] sm:$0xff] }
 0x3af   :  { %1291 = vmatmul.msk.f32.gmra.mxu0 %vm62_vm0, %v48_v58  ;;  %v1713_v58 = vld [vmem:[%s1888_s5 + $0x10] sm:$0xff] }
 0x3b0   :  { %1358 = vtanh.f32 %v246_v59 }
 0x3b6   :  { %v1359_v60 = vpop.eup %1358 }
 0x3b7   :  { %249 = vrot.lane.b32.xlu0 %v1359_v60, %s1474_s22  ;;  %1292 = vmatmul.msk.f32.gmra.mxu0 %vm62_vm0, %v49_v27 }
 0x429   :  { %v250_v62 = vpop.permute.xlu0 %249 }
 0x42a   :  { %v252_v63 = vmul.f32 %v250_v62, %v233_v55 }
 0x42c   :  { %254 = vrot.lane.b32.xlu1 %v252_v63, %s1475_s23  ;;  %v116_v60 = vpop.f32.mrf.mxu0 }
 0x42d   :  { %v117_v61 = vadd.f32 %v1604_v8, %v116_v60  ;;  %v1727_v60 = vld [vmem:[%s1888_s5] sm:$0xff] }
 0x49e   :  { %v1632_v1 = vpop.permute.xlu1 %254 }
 0x49f   :  { %1298 = vmatmul.msk.f32.vlgmr.msrb.gmra.mxu1 %vm128_vm5, %v1632_v1 }
 0x4a0   :  { %522 = vmatpush.msrb.mxu1 %v1549_v0 }
 0x4a2   :  { %523 = vmatpush.msrb.mxu1 %v1557_v2 }
 0x4a4   :  { %524 = vmatpush.msrb.mxu1 %v1569_v5 }
 0x4a6   :  { %525 = vmatpush.msrb.mxu1 %v1578_v6 }
 0x51c   :  { %v275_v9 = vpop.f32.mrf.mxu1 }
 0x51d   :  { %v278_v10 = vadd.f32 %v275_v9, %v111_v4 }
 0x51f   :  { %1360 = vtanh.f32 %v278_v10  ;;  %v1299_v12 = vmul.f32 -1.442695, %v278_v10 }
 0x521   :  { %1362 = vpow2.f32 %v1299_v12 }
 0x525   :  { %v1361_v11 = vpop.eup %1360 }
 0x526   :  { %301 = vrot.lane.b32.xlu2 %v1361_v11, %s1474_s22 }
 0x527   :  { %v1363_v13 = vpop.eup %1362 }
 0x528   :  { %v282_v14 = vadd.f32 1.0, %v1363_v13 }
 0x52a   :  { %1364 = vrcp.f32 %v282_v14  ;;  %v294_v6 = vand.u32 2147483648, %v282_v14  ;;  %vm288_vm11 = vweird.f32 %v282_v14  ;;  %v292_v17 = vand.u32 2147483647, %v282_v14 }
 0x52c   :  { %v295_v19 = vor.u32 1.1754944e-38, %v294_v6  ;;  %vm293_vm13 = vcmp.eq.f32.partialorder %v292_v17, 8.507059e+37 }
 0x530   :  { %v1365_v0 = vpop.eup %1364 }
 0x531   :  { %v284_v2 = vmul.f32 %v1365_v0, %v282_v14  ;;  %vm289_vm10 = vweird.f32 %v1365_v0 }
 0x532   :  { %vm290_vm12 = vmor %vm288_vm11, %vm289_vm10 }
 0x533   :  { %v285_v15 = vsub.f32 1.0, %v284_v2 }
 0x535   :  { %v286_v5 = vmul.f32 %v1365_v0, %v285_v15 }
 0x537   :  { %v287_v16 = vadd.f32 %v1365_v0, %v286_v5 }
 0x539   :  { %v291_v18 = vsel %vm290_vm12, %v1365_v0, %v287_v16 }
 0x53a   :  { %v296_v21 = vsel %vm293_vm13, %v295_v19, %v291_v18 }
 0x53b   :  { %v299_v23 = vmul.f32 %v296_v21, %v246_v59 }
 0x580   :  { %v302_v20 = vpop.permute.xlu2 %301 }
 0x581   :  { %v304_v22 = vmul.f32 %v302_v20, %v296_v21 }
 0x583   :  { %306 = vrot.lane.b32.xlu0 %v304_v22, %s1475_s23 }
 0x5f5   :  { %v307_v24 = vpop.permute.xlu0 %306 }
 0x5f6   :  { %v309_v25 = vadd.f32 %v307_v24, %v299_v23 }
 0x5f8   :  { %1366 = vtanh.f32 %v309_v25 }
 0x5fe   :  { %v1367_v26 = vpop.eup %1366 }
 0x5ff   :  { %312 = vrot.lane.b32.xlu1 %v1367_v26, %s1474_s22  ;;  %v633_v26 = vld [vmem:[%s1886_s4 + $0x10] sm:$0xff] }
 0x671   :  { %v313_v28 = vpop.permute.xlu1 %312 }
 0x672   :  { %v315_v29 = vmul.f32 %v313_v28, %v296_v21  ;;  %v632_v28 = vld [vmem:[%s1886_s4 + $0x8] sm:$0xff] }
 0x674   :  { %317 = vrot.lane.b32.xlu2 %v315_v29, %s1475_s23  ;;  %v631_v29 = vld [vmem:[%s1886_s4] sm:$0xff] }
 0x6ce   :  { %v1649_v30 = vpop.permute.xlu2 %317 }
 0x6cf   :  { %1300 = vmatmul.msk.f32.vlgmr.msra.gmra.mxu1 %vm128_vm5, %v1649_v30 }
 0x74c   :  { %v338_v33 = vpop.f32.mrf.mxu1 }
 0x74d   :  { %v341_v34 = vadd.f32 %v338_v33, %v114_v32  ;;  %v119_v32 = vpop.f32.mrf.mxu0 }
 0x74e   :  { %v120_v33 = vadd.f32 %v1604_v8, %v119_v32 }
 0x74f   :  { %1368 = vtanh.f32 %v341_v34  ;;  %v1301_v37 = vmul.f32 -1.442695, %v341_v34 }
 0x751   :  { %1370 = vpow2.f32 %v1301_v37 }
 0x755   :  { %v1369_v35 = vpop.eup %1368 }
 0x756   :  { %364 = vrot.lane.b32.xlu0 %v1369_v35, %s1474_s22 }
 0x757   :  { %v1371_v38 = vpop.eup %1370 }
 0x758   :  { %v345_v39 = vadd.f32 1.0, %v1371_v38 }
 0x75a   :  { %1372 = vrcp.f32 %v345_v39  ;;  %v357_v45 = vand.u32 2147483648, %v345_v39  ;;  %vm351_vm15 = vweird.f32 %v345_v39  ;;  %v355_v46 = vand.u32 2147483647, %v345_v39 }
 0x75c   :  { %v358_v48 = vor.u32 1.1754944e-38, %v357_v45  ;;  %vm356_vm2 = vcmp.eq.f32.partialorder %v355_v46, 8.507059e+37 }
 0x760   :  { %v1373_v40 = vpop.eup %1372 }
 0x761   :  { %v347_v41 = vmul.f32 %v1373_v40, %v345_v39  ;;  %vm352_vm14 = vweird.f32 %v1373_v40 }
 0x762   :  { %vm353_vm1 = vmor %vm351_vm15, %vm352_vm14 }
 0x763   :  { %v348_v42 = vsub.f32 1.0, %v347_v41 }
 0x765   :  { %v349_v43 = vmul.f32 %v1373_v40, %v348_v42 }
 0x767   :  { %v350_v44 = vadd.f32 %v1373_v40, %v349_v43 }
 0x769   :  { %v354_v47 = vsel %vm353_vm1, %v1373_v40, %v350_v44 }
 0x76a   :  { %v359_v50 = vsel %vm356_vm2, %v358_v48, %v354_v47 }
 0x76b   :  { %v362_v52 = vmul.f32 %v359_v50, %v309_v25  ;;  %v634_v25 = vld [vmem:[%s1886_s4 + $0x18] sm:$0xff] }
 0x76c   :  { %660 = vmatpush.msrb.mxu3 %v634_v25 }
 0x76e   :  { %661 = vmatpush.msrb.mxu3 %v633_v26 }
 0x770   :  { %662 = vmatpush.msrb.mxu3 %v632_v28 }
 0x772   :  { %663 = vmatpush.msrb.mxu3 %v631_v29 }
 0x7c8   :  { %v365_v49 = vpop.permute.xlu0 %364 }
 0x7c9   :  { %v367_v51 = vmul.f32 %v365_v49, %v359_v50 }
 0x7cb   :  { %369 = vrot.lane.b32.xlu1 %v367_v51, %s1475_s23 }
 0x83d   :  { %v370_v53 = vpop.permute.xlu1 %369 }
 0x83e   :  { %v372_v54 = vadd.f32 %v370_v53, %v362_v52 }
 0x840   :  { %1374 = vtanh.f32 %v372_v54 }
 0x846   :  { %v1375_v55 = vpop.eup %1374 }
 0x847   :  { %375 = vrot.lane.b32.xlu2 %v1375_v55, %s1474_s22 }
 0x8a1   :  { %v376_v56 = vpop.permute.xlu2 %375 }
 0x8a2   :  { %v378_v57 = vmul.f32 %v376_v56, %v359_v50 }
 0x8a4   :  { %380 = vrot.lane.b32.xlu0 %v378_v57, %s1475_s23  ;;  %v1708_v57 = vld [vmem:[%s1888_s5 + $0x18] sm:$0xff] }
 0x8a5   :  { %701 = vmatpush.msra.mxu1 %v1708_v57 }
 0x8a7   :  { %702 = vmatpush.msra.mxu1 %v1713_v58 }
 0x916   :  { %v381_v59 = vpop.permute.xlu0 %380 }
 0x917   :  { %1302 = vmatmul.msk.f32.vlgmr.msrb.gmra.mxu2 %vm128_vm5, %v381_v59 }
 0x918   :  { %764 = vmatpush.msrb.mxu2 %v1708_v57 }
 0x91a   :  { %765 = vmatpush.msrb.mxu2 %v1713_v58 }
 0x99a   :  { %v401_v62 = vpop.f32.mrf.mxu2 }
 0x99b   :  { %v404_v63 = vadd.f32 %v401_v62, %v117_v61 }
 0x99d   :  { %1376 = vtanh.f32 %v404_v63  ;;  %v1303_v4 = vmul.f32 -1.442695, %v404_v63 }
 0x99f   :  { %1378 = vpow2.f32 %v1303_v4 }
 0x9a3   :  { %v1377_v3 = vpop.eup %1376 }
 0x9a4   :  { %427 = vrot.lane.b32.xlu1 %v1377_v3, %s1474_s22 }
 0x9a5   :  { %v1379_v9 = vpop.eup %1378 }
 0x9a6   :  { %v408_v10 = vadd.f32 1.0, %v1379_v9  ;;  %v1748_v9 = vld [vmem:[%s1887_s6] ss:$0 sm:$0xff] }
 0x9a8   :  { %1380 = vrcp.f32 %v408_v10  ;;  %v420_v2 = vand.u32 2147483648, %v408_v10  ;;  %vm414_vm4 = vweird.f32 %v408_v10  ;;  %v418_v15 = vand.u32 2147483647, %v408_v10 }
 0x9aa   :  { %v421_v16 = vor.u32 1.1754944e-38, %v420_v2  ;;  %vm419_vm7 = vcmp.eq.f32.partialorder %v418_v15, 8.507059e+37 }
 0x9ae   :  { %v1381_v11 = vpop.eup %1380 }
 0x9af   :  { %v410_v12 = vmul.f32 %v1381_v11, %v408_v10  ;;  %vm415_vm3 = vweird.f32 %v1381_v11 }
 0x9b0   :  { %vm416_vm6 = vmor %vm414_vm4, %vm415_vm3 }
 0x9b1   :  { %v411_v13 = vsub.f32 1.0, %v410_v12 }
 0x9b3   :  { %v412_v14 = vmul.f32 %v1381_v11, %v411_v13 }
 0x9b5   :  { %v413_v0 = vadd.f32 %v1381_v11, %v412_v14 }
 0x9b7   :  { %v417_v5 = vsel %vm416_vm6, %v1381_v11, %v413_v0 }
 0x9b8   :  { %v422_v17 = vsel %vm419_vm7, %v421_v16, %v417_v5 }
 0x9b9   :  { %v425_v19 = vmul.f32 %v422_v17, %v372_v54  ;;  %v50_v54 = vld [vmem:[%s1884_s0 + $0x30] sm:$0xff] }
 0x9ba   :  { %1293 = vmatmul.msk.f32.gmra.mxu0 %vm62_vm0, %v50_v54 }
 0xa16   :  { %v428_v6 = vpop.permute.xlu1 %427 }
 0xa17   :  { %v430_v18 = vmul.f32 %v428_v6, %v422_v17 }
 0xa19   :  { %432 = vrot.lane.b32.xlu2 %v430_v18, %s1475_s23 }
 0xa37   :  { %v122_v62 = vpop.f32.mrf.mxu0 }
 0xa38   :  { %v123_v63 = vadd.f32 %v1604_v8, %v122_v62 }
 0xa73   :  { %v433_v20 = vpop.permute.xlu2 %432 }
 0xa74   :  { %v435_v21 = vadd.f32 %v433_v20, %v425_v19 }
 0xa76   :  { %1382 = vtanh.f32 %v435_v21 }
 0xa7c   :  { %v1383_v22 = vpop.eup %1382 }
 0xa7d   :  { %438 = vrot.lane.b32.xlu0 %v1383_v22, %s1474_s22 }
 0xaef   :  { %v439_v23 = vpop.permute.xlu0 %438 }
 0xaf0   :  { %v441_v24 = vmul.f32 %v439_v23, %v422_v17 }
 0xaf2   :  { %443 = vrot.lane.b32.xlu1 %v441_v24, %s1475_s23 }
 0xb64   :  { %v444_v31 = vpop.permute.xlu1 %443 }
 0xb65   :  { %1304 = vmatmul.msk.f32.vlgmr.msra.gmra.mxu3 %vm128_vm5, %v444_v31 }
 0xb6d   :  { %1310 = vmatmul.msk.f32.vlgmr.msrb.gmra.mxu3 %vm128_vm5, %v1615_v36 }
 0xb75   :  { %1311 = vmatmul.msk.f32.gmra.mxu3 %vm128_vm5, %v1632_v1 }
 0xb7d   :  { %1312 = vmatmul.msk.f32.gmra.mxu3 %vm128_vm5, %v1649_v30 }
 0xb85   :  { %1313 = vmatmul.msk.f32.gmra.mxu3 %vm128_vm5, %v381_v59  ;;  %v1720_v59 = vld [vmem:[%s1888_s5 + $0x8] sm:$0xff] }
 0xb86   :  { %703 = vmatpush.msra.mxu1 %v1720_v59  ;;  %766 = vmatpush.msrb.mxu2 %v1720_v59 }
 0xb88   :  { %704 = vmatpush.msra.mxu1 %v1727_v60  ;;  %767 = vmatpush.msrb.mxu2 %v1727_v60 }
 0xb8d   :  { %1314 = vmatmul.msk.f32.gmra.mxu3 %vm128_vm5, %v444_v31 }
 0xbe8   :  { %v464_v34 = vpop.f32.mrf.mxu3 }
 0xbe9   :  { %v467_v35 = vadd.f32 %v464_v34, %v120_v33 }
 0xbeb   :  { %1384 = vtanh.f32 %v467_v35  ;;  %v1305_v36 = vmul.f32 -1.442695, %v467_v35 }
 0xbed   :  { %1386 = vpow2.f32 %v1305_v36 }
 0xbf1   :  { %v1385_v37 = vpop.eup %1384 }
 0xbf2   :  { %490 = vrot.lane.b32.xlu2 %v1385_v37, %s1474_s22 }
 0xbf3   :  { %v1387_v38 = vpop.eup %1386 }
 0xbf4   :  { %v471_v1 = vadd.f32 1.0, %v1387_v38 }
 0xbf6   :  { %1388 = vrcp.f32 %v471_v1  ;;  %v483_v43 = vand.u32 2147483648, %v471_v1  ;;  %vm477_vm9 = vweird.f32 %v471_v1  ;;  %v481_v44 = vand.u32 2147483647, %v471_v1 }
 0xbf8   :  { %v484_v46 = vor.u32 1.1754944e-38, %v483_v43  ;;  %vm482_vm11 = vcmp.eq.f32.partialorder %v481_v44, 8.507059e+37 }
 0xbfc   :  { %v1389_v39 = vpop.eup %1388 }
 0xbfd   :  { %v473_v30 = vmul.f32 %v1389_v39, %v471_v1  ;;  %vm478_vm8 = vweird.f32 %v1389_v39 }
 0xbfe   :  { %vm479_vm10 = vmor %vm477_vm9, %vm478_vm8 }
 0xbff   :  { %v474_v40 = vsub.f32 1.0, %v473_v30 }
 0xc01   :  { %v475_v41 = vmul.f32 %v1389_v39, %v474_v40 }
 0xc03   :  { %v476_v42 = vadd.f32 %v1389_v39, %v475_v41 }
 0xc05   :  { %v480_v45 = vsel %vm479_vm10, %v1389_v39, %v476_v42 }
 0xc06   :  { %v485_v48 = vsel %vm482_vm11, %v484_v46, %v480_v45 }
 0xc07   :  { %v488_v50 = vmul.f32 %v485_v48, %v435_v21 }
 0xc4c   :  { %v491_v47 = vpop.permute.xlu2 %490 }
 0xc4d   :  { %v493_v49 = vmul.f32 %v491_v47, %v485_v48 }
 0xc4f   :  { %495 = vrot.lane.b32.xlu0 %v493_v49, %s1475_s23 }
 0xcc1   :  { %v496_v51 = vpop.permute.xlu0 %495 }
 0xcc2   :  { %v1696_v52 = vadd.f32 %v496_v51, %v488_v50  ;;  %v51_v51 = vld [vmem:[%s1884_s0 + $0x38] sm:$0xff] }
 0xcc3   :  { %1294 = vmatmul.msk.f32.gmra.mxu0 %vm62_vm0, %v51_v51 }
 0xcc4   :  { %1390 = vtanh.f32 %v1696_v52 }
 0xcca   :  { %v1391_v53 = vpop.eup %1390 }
 0xccb   :  { %501 = vrot.lane.b32.xlu1 %v1391_v53, %s1474_s22 }
 0xd3d   :  { %v502_v55 = vpop.permute.xlu1 %501 }
 0xd3e   :  { %v504_v56 = vmul.f32 %v502_v55, %v485_v48 }
 0xd40   :  { %506 = vrot.lane.b32.xlu2 %v504_v56, %s1475_s23 }
 0xd9a   :  { %v507_v61 = vpop.permute.xlu2 %506 }
 0xd9b   :  { %1306 = vmatmul.msk.f32.vlgmr.msrb.gmra.mxu1 %vm128_vm5, %v507_v61  ;;  %1315 = vmatmul.msk.f32.gmra.mxu3 %vm128_vm5, %v507_v61 }
 0xd9c   :  { %827 = vmatpush.msrb.mxu1 %v1708_v57 }
 0xd9e   :  { %828 = vmatpush.msrb.mxu1 %v1713_v58 }
 0xda0   :  { %829 = vmatpush.msrb.mxu1 %v1720_v59 }
 0xda2   :  { %830 = vmatpush.msrb.mxu1 %v1727_v60 }
 0xda3   :  { %705 = vmatmul.f32.vlgmr.msra.gmra.mxu1 %v1473_v7  ;;  %v665_v7 = vpop.f32.mrf.mxu3 }
 0xda4   :  { %953 = vmatpush.msra.mxu1 %v1708_v57  ;;  %v666_v10 = vadd.f32 %v1748_v9, %v665_v7 }
 0xda6   :  { %954 = vmatpush.msra.mxu1 %v1713_v58 }
 0xda8   :  { %955 = vmatpush.msra.mxu1 %v1720_v59 }
 0xdaa   :  { %956 = vmatpush.msra.mxu1 %v1727_v60 }
 0xdab   :  { %v668_v55 = vpop.f32.mrf.mxu3 }
 0xdac   :  { %v669_v56 = vadd.f32 %v1748_v9, %v668_v55 }
 0xe18   :  { %v527_v3 = vpop.f32.mrf.mxu1 }
 0xe19   :  { %v530_v4 = vadd.f32 %v527_v3, %v123_v63 }
 0xe1b   :  { %1392 = vtanh.f32 %v530_v4  ;;  %v1307_v8 = vmul.f32 -1.442695, %v530_v4 }
 0xe20   :  { %v706_v11 = vpop.f32.mrf.mxu1 }
 0xe21   :  { %v1393_v12 = vpop.eup %1392  ;;  %v709_v13 = vadd.f32 %v706_v11, %v666_v10 }
 0xe22   :  { %553 = vrot.lane.b32.xlu0 %v1393_v12, %s1474_s22 }
 0xe23   :  { %1394 = vtanh.f32 %v709_v13  ;;  %v1318_v0 = vmul.f32 -1.442695, %v709_v13 }
 0xe24   :  { %1396 = vpow2.f32 %v1307_v8 }
 0xe25   :  { %1398 = vpow2.f32 %v1318_v0 }
 0xe29   :  { %v1395_v14 = vpop.eup %1394 }
 0xe2a   :  { %732 = vrot.lane.b32.xlu1 %v1395_v14, %s1474_s22  ;;  %v1397_v2 = vpop.eup %1396 }
 0xe2b   :  { %v534_v15 = vadd.f32 1.0, %v1397_v2  ;;  %v1399_v5 = vpop.eup %1398 }
 0xe2c   :  { %v713_v16 = vadd.f32 1.0, %v1399_v5 }
 0xe2d   :  { %1400 = vrcp.f32 %v534_v15  ;;  %v546_v24 = vand.u32 2147483648, %v534_v15  ;;  %vm540_vm13 = vweird.f32 %v534_v15  ;;  %v544_v25 = vand.u32 2147483647, %v534_v15 }
 0xe2e   :  { %1402 = vrcp.f32 %v713_v16  ;;  %v725_v34 = vand.u32 2147483648, %v713_v16  ;;  %vm719_vm2 = vweird.f32 %v713_v16  ;;  %v723_v35 = vand.u32 2147483647, %v713_v16 }
 0xe2f   :  { %v547_v28 = vor.u32 1.1754944e-38, %v546_v24  ;;  %vm545_vm15 = vcmp.eq.f32.partialorder %v544_v25, 8.507059e+37  ;;  %v671_v24 = vpop.f32.mrf.mxu3 }
 0xe30   :  { %v726_v36 = vor.u32 1.1754944e-38, %v725_v34  ;;  %vm724_vm4 = vcmp.eq.f32.partialorder %v723_v35, 8.507059e+37  ;;  %v672_v25 = vadd.f32 %v1748_v9, %v671_v24 }
 0xe33   :  { %v1401_v6 = vpop.eup %1400 }
 0xe34   :  { %v536_v17 = vmul.f32 %v1401_v6, %v534_v15  ;;  %v1403_v19 = vpop.eup %1402  ;;  %vm541_vm12 = vweird.f32 %v1401_v6 }
 0xe35   :  { %v715_v21 = vmul.f32 %v1403_v19, %v713_v16  ;;  %vm542_vm14 = vmor %vm540_vm13, %vm541_vm12  ;;  %vm720_vm1 = vweird.f32 %v1403_v19 }
 0xe36   :  { %v537_v18 = vsub.f32 1.0, %v536_v17  ;;  %vm721_vm3 = vmor %vm719_vm2, %vm720_vm1 }
 0xe37   :  { %v716_v23 = vsub.f32 1.0, %v715_v21  ;;  %v674_v51 = vpop.f32.mrf.mxu3 }
 0xe38   :  { %v538_v20 = vmul.f32 %v1401_v6, %v537_v18 }
 0xe39   :  { %v717_v27 = vmul.f32 %v1403_v19, %v716_v23 }
 0xe3a   :  { %v539_v22 = vadd.f32 %v1401_v6, %v538_v20 }
 0xe3b   :  { %v718_v33 = vadd.f32 %v1403_v19, %v717_v27 }
 0xe3c   :  { %v543_v26 = vsel %vm542_vm14, %v1401_v6, %v539_v22 }
 0xe3d   :  { %v548_v31 = vsel %vm545_vm15, %v547_v28, %v543_v26  ;;  %v722_v37 = vsel %vm721_vm3, %v1403_v19, %v718_v33 }
 0xe3e   :  { %v727_v1 = vsel %vm724_vm4, %v726_v36, %v722_v37  ;;  %v551_v30 = vmul.f32 %v548_v31, %v1696_v52 }
 0xe3f   :  { %v730_v43 = vmul.f32 0.0, %v727_v1 }
 0xe94   :  { %v554_v29 = vpop.permute.xlu0 %553 }
 0xe95   :  { %v556_v32 = vmul.f32 %v554_v29, %v548_v31 }
 0xe97   :  { %558 = vrot.lane.b32.xlu2 %v556_v32, %s1475_s23 }
 0xe9c   :  { %v733_v38 = vpop.permute.xlu1 %732 }
 0xe9d   :  { %v735_v39 = vmul.f32 %v733_v38, %v727_v1 }
 0xe9f   :  { %737 = vrot.lane.b32.xlu0 %v735_v39, %s1475_s23 }
 0xef1   :  { %v559_v40 = vpop.permute.xlu2 %558 }
 0xef2   :  { %v1756_v41 = vadd.f32 %v559_v40, %v551_v30 }
 0xef4   :  { %1404 = vtanh.f32 %v1756_v41 }
 0xefa   :  { %v1405_v42 = vpop.eup %1404 }
 0xefb   :  { %564 = vrot.lane.b32.xlu1 %v1405_v42, %s1474_s22 }
 0xf11   :  { %v738_v44 = vpop.permute.xlu0 %737 }
 0xf12   :  { %v740_v45 = vadd.f32 %v738_v44, %v730_v43 }
 0xf14   :  { %1406 = vtanh.f32 %v740_v45 }
 0xf1a   :  { %v1407_v46 = vpop.eup %1406 }
 0xf1b   :  { %743 = vrot.lane.b32.xlu2 %v1407_v46, %s1474_s22 }
 0xf6d   :  { %v565_v47 = vpop.permute.xlu1 %564 }
 0xf6e   :  { %v567_v48 = vmul.f32 %v565_v47, %v548_v31 }
 0xf70   :  { %569 = vrot.lane.b32.xlu0 %v567_v48, %s1475_s23 }
 0xf75   :  { %v744_v49 = vpop.permute.xlu2 %743 }
 0xf76   :  { %v746_v50 = vmul.f32 %v744_v49, %v727_v1 }
 0xf78   :  { %748 = vrot.lane.b32.xlu1 %v746_v50, %s1475_s23 }
 0xfe2   :  { %v570_v52 = vpop.permute.xlu0 %569 }
 0xfe3   :  { %1308 = vmatmul.msk.f32.vlgmr.msra.gmra.mxu2 %vm128_vm5, %v570_v52  ;;  %1316 = vmatmul.msk.f32.gmra.mxu3 %vm128_vm5, %v570_v52  ;;  %v675_v52 = vadd.f32 %v1748_v9, %v674_v51 }
 0xfe4   :  { %890 = vmatpush.msra.mxu2 %v1708_v57 }
 0xfe6   :  { %891 = vmatpush.msra.mxu2 %v1713_v58 }
 0xfe8   :  { %892 = vmatpush.msra.mxu2 %v1720_v59 }
 0xfea   :  { %v749_v53 = vpop.permute.xlu1 %748  ;;  %893 = vmatpush.msra.mxu2 %v1727_v60 }
 0xfeb   :  { %1319 = vmatmul.msk.f32.vlgmr.msrb.gmra.mxu2 %vm128_vm5, %v749_v53 }
 0xfec   :  { %1016 = vmatpush.msrb.mxu2 %v1708_v57 }
 0xfee   :  { %1017 = vmatpush.msrb.mxu2 %v1713_v58 }
 0xff0   :  { %1018 = vmatpush.msrb.mxu2 %v1720_v59 }
 0xff2   :  { %1019 = vmatpush.msrb.mxu2 %v1727_v60 }
0x1066   :  { %v1778_v54 = vpop.f32.mrf.mxu2 }
0x106e   :  { %v769_v61 = vpop.f32.mrf.mxu2 }
0x106f   :  { %v772_v62 = vadd.f32 %v769_v61, %v669_v56 }
0x1071   :  { %1408 = vtanh.f32 %v772_v62  ;;  %v1320_v3 = vmul.f32 -1.442695, %v772_v62 }
0x1073   :  { %1410 = vpow2.f32 %v1320_v3 }
0x1077   :  { %v1409_v63 = vpop.eup %1408 }
0x1078   :  { %795 = vrot.lane.b32.xlu2 %v1409_v63, %s1474_s22 }
0x1079   :  { %v1411_v4 = vpop.eup %1410 }
0x107a   :  { %v776_v7 = vadd.f32 1.0, %v1411_v4 }
0x107c   :  { %1412 = vrcp.f32 %v776_v7  ;;  %v788_v8 = vand.u32 2147483648, %v776_v7  ;;  %vm782_vm7 = vweird.f32 %v776_v7  ;;  %v786_v0 = vand.u32 2147483647, %v776_v7 }
0x107e   :  { %v789_v15 = vor.u32 1.1754944e-38, %v788_v8  ;;  %vm787_vm9 = vcmp.eq.f32.partialorder %v786_v0, 8.507059e+37 }
0x1082   :  { %v1413_v10 = vpop.eup %1412 }
0x1083   :  { %v778_v11 = vmul.f32 %v1413_v10, %v776_v7  ;;  %vm783_vm6 = vweird.f32 %v1413_v10 }
0x1084   :  { %vm784_vm8 = vmor %vm782_vm7, %vm783_vm6 }
0x1085   :  { %v779_v12 = vsub.f32 1.0, %v778_v11 }
0x1087   :  { %v780_v13 = vmul.f32 %v1413_v10, %v779_v12 }
0x1089   :  { %v781_v14 = vadd.f32 %v1413_v10, %v780_v13 }
0x108b   :  { %v785_v2 = vsel %vm784_vm8, %v1413_v10, %v781_v14 }
0x108c   :  { %v790_v16 = vsel %vm787_vm9, %v789_v15, %v785_v2 }
0x108d   :  { %v793_v17 = vmul.f32 %v790_v16, %v740_v45 }
0x10d2   :  { %v796_v5 = vpop.permute.xlu2 %795 }
0x10d3   :  { %v798_v6 = vmul.f32 %v796_v5, %v790_v16 }
0x10d5   :  { %800 = vrot.lane.b32.xlu0 %v798_v6, %s1475_s23 }
0x1147   :  { %v801_v18 = vpop.permute.xlu0 %800 }
0x1148   :  { %v803_v19 = vadd.f32 %v801_v18, %v793_v17  ;;  %v677_v17 = vpop.f32.mrf.mxu3 }
0x1149   :  { %v678_v18 = vadd.f32 %v1748_v9, %v677_v17 }
0x114a   :  { %1414 = vtanh.f32 %v803_v19 }
0x1150   :  { %v1415_v20 = vpop.eup %1414 }
0x1151   :  { %806 = vrot.lane.b32.xlu1 %v1415_v20, %s1474_s22 }
0x11c3   :  { %v807_v21 = vpop.permute.xlu1 %806 }
0x11c4   :  { %v809_v22 = vmul.f32 %v807_v21, %v790_v16 }
0x11c6   :  { %811 = vrot.lane.b32.xlu2 %v809_v22, %s1475_s23 }
0x1220   :  { %v812_v23 = vpop.permute.xlu2 %811 }
0x1221   :  { %1321 = vmatmul.msk.f32.vlgmr.msrb.gmra.mxu1 %vm128_vm5, %v812_v23 }
0x1222   :  { %1079 = vmatpush.msrb.mxu1 %v1708_v57 }
0x1224   :  { %1080 = vmatpush.msrb.mxu1 %v1713_v58 }
0x1226   :  { %1081 = vmatpush.msrb.mxu1 %v1720_v59 }
0x1228   :  { %1082 = vmatpush.msrb.mxu1 %v1727_v60 }
0x129e   :  { %v832_v26 = vpop.f32.mrf.mxu1 }
0x129f   :  { %v835_v27 = vadd.f32 %v832_v26, %v672_v25 }
0x12a1   :  { %1416 = vtanh.f32 %v835_v27  ;;  %v1322_v29 = vmul.f32 -1.442695, %v835_v27 }
0x12a3   :  { %1418 = vpow2.f32 %v1322_v29 }
0x12a7   :  { %v1417_v28 = vpop.eup %1416 }
0x12a8   :  { %858 = vrot.lane.b32.xlu0 %v1417_v28, %s1474_s22 }
0x12a9   :  { %v1419_v31 = vpop.eup %1418 }
0x12aa   :  { %v839_v32 = vadd.f32 1.0, %v1419_v31 }
0x12ac   :  { %1420 = vrcp.f32 %v839_v32  ;;  %v851_v38 = vand.u32 2147483648, %v839_v32  ;;  %vm845_vm11 = vweird.f32 %v839_v32  ;;  %v849_v1 = vand.u32 2147483647, %v839_v32 }
0x12ae   :  { %v852_v30 = vor.u32 1.1754944e-38, %v851_v38  ;;  %vm850_vm13 = vcmp.eq.f32.partialorder %v849_v1, 8.507059e+37 }
0x12b2   :  { %v1421_v33 = vpop.eup %1420 }
0x12b3   :  { %v841_v34 = vmul.f32 %v1421_v33, %v839_v32  ;;  %vm846_vm10 = vweird.f32 %v1421_v33 }
0x12b4   :  { %vm847_vm12 = vmor %vm845_vm11, %vm846_vm10 }
0x12b5   :  { %v842_v35 = vsub.f32 1.0, %v841_v34 }
0x12b7   :  { %v843_v37 = vmul.f32 %v1421_v33, %v842_v35 }
0x12b9   :  { %v844_v36 = vadd.f32 %v1421_v33, %v843_v37 }
0x12bb   :  { %v848_v39 = vsel %vm847_vm12, %v1421_v33, %v844_v36 }
0x12bc   :  { %v853_v42 = vsel %vm850_vm13, %v852_v30, %v848_v39 }
0x12bd   :  { %v856_v44 = vmul.f32 %v853_v42, %v803_v19 }
0x131a   :  { %v859_v40 = vpop.permute.xlu0 %858 }
0x131b   :  { %v861_v43 = vmul.f32 %v859_v40, %v853_v42 }
0x131d   :  { %863 = vrot.lane.b32.xlu1 %v861_v43, %s1475_s23 }
0x138f   :  { %v864_v45 = vpop.permute.xlu1 %863 }
0x1390   :  { %v866_v46 = vadd.f32 %v864_v45, %v856_v44  ;;  %v680_v44 = vpop.f32.mrf.mxu3 }
0x1391   :  { %v681_v45 = vadd.f32 %v1748_v9, %v680_v44 }
0x1392   :  { %1422 = vtanh.f32 %v866_v46 }
0x1398   :  { %v1423_v47 = vpop.eup %1422 }
0x1399   :  { %869 = vrot.lane.b32.xlu2 %v1423_v47, %s1474_s22 }
0x13f3   :  { %v870_v48 = vpop.permute.xlu2 %869 }
0x13f4   :  { %v872_v49 = vmul.f32 %v870_v48, %v853_v42 }
0x13f6   :  { %874 = vrot.lane.b32.xlu0 %v872_v49, %s1475_s23 }
0x1468   :  { %v875_v50 = vpop.permute.xlu0 %874 }
0x1469   :  { %1323 = vmatmul.msk.f32.vlgmr.msra.gmra.mxu2 %vm128_vm5, %v875_v50 }
0x146a   :  { %1142 = vmatpush.msra.mxu2 %v1708_v57 }
0x146c   :  { %1143 = vmatpush.msra.mxu2 %v1713_v58 }
0x146e   :  { %1144 = vmatpush.msra.mxu2 %v1720_v59 }
0x1470   :  { %1145 = vmatpush.msra.mxu2 %v1727_v60 }
0x14ec   :  { %v895_v53 = vpop.f32.mrf.mxu2 }
0x14ed   :  { %v898_v55 = vadd.f32 %v895_v53, %v675_v52 }
0x14ef   :  { %1424 = vtanh.f32 %v898_v55  ;;  %v1324_v61 = vmul.f32 -1.442695, %v898_v55 }
0x14f1   :  { %1426 = vpow2.f32 %v1324_v61  ;;  %v125_v61 = vpop.f32.mrf.mxu0 }
0x14f5   :  { %v1425_v56 = vpop.eup %1424 }
0x14f6   :  { %921 = vrot.lane.b32.xlu1 %v1425_v56, %s1474_s22 }
0x14f7   :  { %v1427_v62 = vpop.eup %1426 }
0x14f8   :  { %v902_v63 = vadd.f32 1.0, %v1427_v62 }
0x14fa   :  { %1428 = vrcp.f32 %v902_v63  ;;  %v914_v60 = vand.u32 2147483648, %v902_v63  ;;  %vm908_vm15 = vweird.f32 %v902_v63  ;;  %v912_v7 = vand.u32 2147483647, %v902_v63 }
0x14fc   :  { %v915_v11 = vor.u32 1.1754944e-38, %v914_v60  ;;  %vm913_vm2 = vcmp.eq.f32.partialorder %v912_v7, 8.507059e+37 }
0x1500   :  { %v1429_v57 = vpop.eup %1428 }
0x1501   :  { %v904_v58 = vmul.f32 %v1429_v57, %v902_v63  ;;  %vm909_vm14 = vweird.f32 %v1429_v57 }
0x1502   :  { %vm910_vm1 = vmor %vm908_vm15, %vm909_vm14 }
0x1503   :  { %v905_v3 = vsub.f32 1.0, %v904_v58  ;;  %v1472_v58 = vld [vmem:[%s1885_s3] ss:$0 sm:$0xff] }
0x1505   :  { %v906_v59 = vmul.f32 %v1429_v57, %v905_v3  ;;  %v126_v3 = vadd.f32 %v1472_v58, %v125_v61 }
0x1507   :  { %v907_v4 = vadd.f32 %v1429_v57, %v906_v59  ;;  %v593_v60 = vadd.f32 %v1778_v54, %v126_v3 }
0x1509   :  { %v911_v10 = vsel %vm910_vm1, %v1429_v57, %v907_v4 }
0x150a   :  { %v916_v13 = vsel %vm913_vm2, %v915_v11, %v911_v10 }
0x150b   :  { %v919_v8 = vmul.f32 %v916_v13, %v866_v46 }
0x1568   :  { %v922_v12 = vpop.permute.xlu1 %921 }
0x1569   :  { %v924_v14 = vmul.f32 %v922_v12, %v916_v13 }
0x156b   :  { %926 = vrot.lane.b32.xlu2 %v924_v14, %s1475_s23 }
0x15c5   :  { %v927_v0 = vpop.permute.xlu2 %926 }
0x15c6   :  { %v929_v2 = vadd.f32 %v927_v0, %v919_v8 }
0x15c8   :  { %1430 = vtanh.f32 %v929_v2 }
0x15ce   :  { %v1431_v15 = vpop.eup %1430 }
0x15cf   :  { %932 = vrot.lane.b32.xlu0 %v1431_v15, %s1474_s22 }
0x1641   :  { %v933_v5 = vpop.permute.xlu0 %932 }
0x1642   :  { %v935_v16 = vmul.f32 %v933_v5, %v916_v13 }
0x1644   :  { %937 = vrot.lane.b32.xlu1 %v935_v16, %s1475_s23 }
0x16b6   :  { %v938_v6 = vpop.permute.xlu1 %937 }
0x16b7   :  { %1325 = vmatmul.msk.f32.vlgmr.msra.gmra.mxu1 %vm128_vm5, %v938_v6 }
0x1734   :  { %v958_v19 = vpop.f32.mrf.mxu1 }
0x1735   :  { %v961_v20 = vadd.f32 %v958_v19, %v678_v18 }
0x1737   :  { %1432 = vtanh.f32 %v961_v20  ;;  %v1326_v22 = vmul.f32 -1.442695, %v961_v20 }
0x1739   :  { %1434 = vpow2.f32 %v1326_v22 }
0x173d   :  { %v1433_v21 = vpop.eup %1432 }
0x173e   :  { %984 = vrot.lane.b32.xlu2 %v1433_v21, %s1474_s22 }
0x173f   :  { %v1435_v23 = vpop.eup %1434 }
0x1740   :  { %v965_v24 = vadd.f32 1.0, %v1435_v23 }
0x1742   :  { %1436 = vrcp.f32 %v965_v24  ;;  %v977_v31 = vand.u32 2147483648, %v965_v24  ;;  %vm971_vm4 = vweird.f32 %v965_v24  ;;  %v975_v32 = vand.u32 2147483647, %v965_v24 }
0x1744   :  { %v978_v34 = vor.u32 1.1754944e-38, %v977_v31  ;;  %vm976_vm7 = vcmp.eq.f32.partialorder %v975_v32, 8.507059e+37 }
0x1748   :  { %v1437_v25 = vpop.eup %1436 }
0x1749   :  { %v967_v26 = vmul.f32 %v1437_v25, %v965_v24  ;;  %vm972_vm3 = vweird.f32 %v1437_v25 }
0x174a   :  { %vm973_vm6 = vmor %vm971_vm4, %vm972_vm3 }
0x174b   :  { %v968_v27 = vsub.f32 1.0, %v967_v26 }
0x174d   :  { %v969_v28 = vmul.f32 %v1437_v25, %v968_v27 }
0x174f   :  { %v970_v29 = vadd.f32 %v1437_v25, %v969_v28 }
0x1751   :  { %v974_v33 = vsel %vm973_vm6, %v1437_v25, %v970_v29  ;;  %v683_v29 = vpop.f32.mrf.mxu3 }
0x1752   :  { %v979_v37 = vsel %vm976_vm7, %v978_v34, %v974_v33  ;;  %v684_v31 = vadd.f32 %v1748_v9, %v683_v29  ;;  %v1223_v29 = vld [vmem:[%s1891_s9 + $0x8] sm:$0xff] }
0x1753   :  { %v982_v38 = vmul.f32 %v979_v37, %v929_v2  ;;  %v1309_v2 = vmul.f32 -1.442695, %v593_v60 }
0x1798   :  { %v985_v35 = vpop.permute.xlu2 %984 }
0x1799   :  { %v987_v36 = vmul.f32 %v985_v35, %v979_v37 }
0x179b   :  { %989 = vrot.lane.b32.xlu0 %v987_v36, %s1475_s23 }
0x180d   :  { %v990_v1 = vpop.permute.xlu0 %989 }
0x180e   :  { %v992_v39 = vadd.f32 %v990_v1, %v982_v38 }
0x1810   :  { %1438 = vtanh.f32 %v992_v39 }
0x1816   :  { %v1439_v30 = vpop.eup %1438 }
0x1817   :  { %995 = vrot.lane.b32.xlu1 %v1439_v30, %s1474_s22 }
0x1889   :  { %v996_v40 = vpop.permute.xlu1 %995 }
0x188a   :  { %v998_v42 = vmul.f32 %v996_v40, %v979_v37 }
0x188c   :  { %1000 = vrot.lane.b32.xlu2 %v998_v42, %s1475_s23 }
0x18e6   :  { %v1001_v43 = vpop.permute.xlu2 %1000 }
0x18e7   :  { %1327 = vmatmul.msk.f32.vlgmr.msrb.gmra.mxu2 %vm128_vm5, %v1001_v43 }
0x18e8   :  { %1245 = vmatpush.msrb.mxu2 %v1223_v29 }
0x196a   :  { %v1021_v46 = vpop.f32.mrf.mxu2 }
0x196b   :  { %v1024_v47 = vadd.f32 %v1021_v46, %v681_v45 }
0x196d   :  { %1440 = vtanh.f32 %v1024_v47  ;;  %v1328_v49 = vmul.f32 -1.442695, %v1024_v47 }
0x196f   :  { %1442 = vpow2.f32 %v1328_v49 }
0x1973   :  { %v1441_v48 = vpop.eup %1440 }
0x1974   :  { %1047 = vrot.lane.b32.xlu0 %v1441_v48, %s1474_s22 }
0x1975   :  { %v1443_v50 = vpop.eup %1442 }
0x1976   :  { %v1028_v51 = vadd.f32 1.0, %v1443_v50 }
0x1978   :  { %1444 = vrcp.f32 %v1028_v51  ;;  %v1040_v63 = vand.u32 2147483648, %v1028_v51  ;;  %vm1034_vm9 = vweird.f32 %v1028_v51  ;;  %v1038_v57 = vand.u32 2147483647, %v1028_v51 }
0x1979   :  { %1446 = vtanh.f32 %v593_v60 }
0x197a   :  { %v1041_v4 = vor.u32 1.1754944e-38, %v1040_v63  ;;  %vm1039_vm11 = vcmp.eq.f32.partialorder %v1038_v57, 8.507059e+37 }
0x197e   :  { %v1445_v52 = vpop.eup %1444 }
0x197f   :  { %v1030_v53 = vmul.f32 %v1445_v52, %v1028_v51  ;;  %vm1035_vm8 = vweird.f32 %v1445_v52  ;;  %v1447_v12 = vpop.eup %1446 }
0x1980   :  { %vm1036_vm10 = vmor %vm1034_vm9, %vm1035_vm8 }
0x1981   :  { %v1031_v55 = vsub.f32 1.0, %v1030_v53 }
0x1983   :  { %v1032_v56 = vmul.f32 %v1445_v52, %v1031_v55 }
0x1985   :  { %v1033_v62 = vadd.f32 %v1445_v52, %v1032_v56 }
0x1987   :  { %v1037_v59 = vsel %vm1036_vm10, %v1445_v52, %v1033_v62 }
0x1988   :  { %v1042_v10 = vsel %vm1039_vm11, %v1041_v4, %v1037_v59 }
0x1989   :  { %v1045_v13 = vmul.f32 %v1042_v10, %v992_v39 }
0x19e6   :  { %v1048_v7 = vpop.permute.xlu0 %1047 }
0x19e7   :  { %v1050_v11 = vmul.f32 %v1048_v7, %v1042_v10 }
0x19e9   :  { %1052 = vrot.lane.b32.xlu1 %v1050_v11, %s1475_s23 }
0x19f1   :  { %616 = vrot.lane.b32.xlu1 %v1447_v12, %s1474_s22 }
0x1a5b   :  { %v1053_v14 = vpop.permute.xlu1 %1052 }
0x1a5c   :  { %v1820_v8 = vadd.f32 %v1053_v14, %v1045_v13 }
0x1a5e   :  { %1448 = vtanh.f32 %v1820_v8 }
0x1a5f   :  { %1450 = vpow2.f32 %v1309_v2 }
0x1a63   :  { %v617_v25 = vpop.permute.xlu1 %616 }
0x1a64   :  { %v1449_v0 = vpop.eup %1448 }
0x1a65   :  { %1058 = vrot.lane.b32.xlu2 %v1449_v0, %s1474_s22  ;;  %v1451_v54 = vpop.eup %1450 }
0x1a66   :  { %v597_v15 = vadd.f32 1.0, %v1451_v54 }
0x1a68   :  { %1452 = vrcp.f32 %v597_v15  ;;  %v609_v21 = vand.u32 2147483648, %v597_v15  ;;  %vm603_vm13 = vweird.f32 %v597_v15  ;;  %v607_v22 = vand.u32 2147483647, %v597_v15 }
0x1a6a   :  { %v610_v24 = vor.u32 1.1754944e-38, %v609_v21  ;;  %vm608_vm15 = vcmp.eq.f32.partialorder %v607_v22, 8.507059e+37 }
0x1a6e   :  { %v1453_v5 = vpop.eup %1452 }
0x1a6f   :  { %v599_v16 = vmul.f32 %v1453_v5, %v597_v15  ;;  %vm604_vm12 = vweird.f32 %v1453_v5 }
0x1a70   :  { %vm605_vm14 = vmor %vm603_vm13, %vm604_vm12 }
0x1a71   :  { %v600_v6 = vsub.f32 1.0, %v599_v16 }
0x1a73   :  { %v601_v17 = vmul.f32 %v1453_v5, %v600_v6 }
0x1a75   :  { %v602_v19 = vadd.f32 %v1453_v5, %v601_v17 }
0x1a77   :  { %v606_v23 = vsel %vm605_vm14, %v1453_v5, %v602_v19 }
0x1a78   :  { %v611_v26 = vsel %vm608_vm15, %v610_v24, %v606_v23  ;;  %v1191_v23 = vld [vmem:[%s1889_s7 + $0x18] sm:$0xff]  ;;  %v1190_v24 = vld [vmem:[%s1889_s7 + $0x10] sm:$0xff] }
0x1a79   :  { %v619_v27 = vmul.f32 %v617_v25, %v611_v26  ;;  %v614_v35 = vmul.f32 %v611_v26, %v1756_v41  ;;  %1213 = vmatpush.msra.mxu1 %v1191_v23  ;;  %v1189_v25 = vld [vmem:[%s1889_s7 + $0x8] sm:$0xff] }
0x1a7b   :  { %1214 = vmatpush.msra.mxu1 %v1190_v24 }
0x1a7d   :  { %1215 = vmatpush.msra.mxu1 %v1189_v25 }
0x1abf   :  { %v1059_v18 = vpop.permute.xlu2 %1058 }
0x1ac0   :  { %v1061_v20 = vmul.f32 %v1059_v18, %v1042_v10 }
0x1ac2   :  { %1063 = vrot.lane.b32.xlu0 %v1061_v20, %s1475_s23 }
0x1aca   :  { %621 = vrot.lane.b32.xlu0 %v619_v27, %s1475_s23 }
0x1b34   :  { %v1064_v28 = vpop.permute.xlu0 %1063 }
0x1b35   :  { %1329 = vmatmul.msk.f32.vlgmr.msrb.gmra.mxu1 %vm128_vm5, %v1064_v28 }
0x1b3c   :  { %v622_v34 = vpop.permute.xlu0 %621 }
0x1b3d   :  { %v624_v37 = vadd.f32 %v622_v34, %v614_v35  ;;  %v1252_v34 = vld [vmem:[%s1893_s11] sm:$0xff] }
0x1b3e   :  { %v1341_v35 = vld [vmem:[%s1890_s8] ss:$0 sm:$0xff] }
0x1bb2   :  { %v1084_v32 = vpop.f32.mrf.mxu1 }
0x1bb3   :  { %v1087_v33 = vadd.f32 %v1084_v32, %v684_v31  ;;  %v1222_v32 = vld [vmem:[%s1891_s9] sm:$0xff] }
0x1bb4   :  { %1246 = vmatpush.msrb.mxu2 %v1222_v32 }
0x1bb5   :  { %1454 = vtanh.f32 %v1087_v33  ;;  %v1330_v1 = vmul.f32 -1.442695, %v1087_v33  ;;  %v1253_v33 = vld [vmem:[%s1893_s11 + $0x8] sm:$0xff] }
0x1bb6   :  { %1456 = vtanh.f32 %v624_v37  ;;  %1275 = vmatpush.msrb.mxu0 %v1253_v33 }
0x1bb7   :  { %1458 = vpow2.f32 %v1330_v1  ;;  %v1342_v1 = vld [vmem:[%s1892_s10] ss:$0 sm:$0xff] }
0x1bb8   :  { %1276 = vmatpush.msrb.mxu0 %v1252_v34 }
0x1bbb   :  { %v1455_v36 = vpop.eup %1454 }
0x1bbc   :  { %1110 = vrot.lane.b32.xlu2 %v1455_v36, %s1474_s22  ;;  %v1457_v38 = vpop.eup %1456 }
0x1bbd   :  { %v1459_v39 = vpop.eup %1458 }
0x1bbe   :  { %v1091_v30 = vadd.f32 1.0, %v1459_v39 }
0x1bc0   :  { %1460 = vrcp.f32 %v1091_v30  ;;  %v1103_v41 = vand.u32 2147483648, %v1091_v30  ;;  %vm1097_vm2 = vweird.f32 %v1091_v30  ;;  %v1101_v46 = vand.u32 2147483647, %v1091_v30 }
0x1bc2   :  { %v1104_v48 = vor.u32 1.1754944e-38, %v1103_v41  ;;  %vm1102_vm4 = vcmp.eq.f32.partialorder %v1101_v46, 8.507059e+37 }
0x1bc4   :  { %627 = vrot.lane.b32.xlu2 %v1457_v38, %s1474_s22 }
0x1bc6   :  { %v1461_v40 = vpop.eup %1460 }
0x1bc7   :  { %v1093_v42 = vmul.f32 %v1461_v40, %v1091_v30  ;;  %vm1098_vm1 = vweird.f32 %v1461_v40 }
0x1bc8   :  { %vm1099_vm3 = vmor %vm1097_vm2, %vm1098_vm1 }
0x1bc9   :  { %v1094_v43 = vsub.f32 1.0, %v1093_v42  ;;  %v1343_v42 = vld [vmem:[%s1894_s12] ss:$0 sm:$0xff] }
0x1bcb   :  { %v1095_v44 = vmul.f32 %v1461_v40, %v1094_v43 }
0x1bcd   :  { %v1096_v45 = vadd.f32 %v1461_v40, %v1095_v44 }
0x1bcf   :  { %v1100_v47 = vsel %vm1099_vm3, %v1461_v40, %v1096_v45 }
0x1bd0   :  { %v1105_v50 = vsel %vm1102_vm4, %v1104_v48, %v1100_v47 }
0x1bd1   :  { %v1108_v55 = vmul.f32 %v1105_v50, %v1820_v8 }
0x1c16   :  { %v1111_v49 = vpop.permute.xlu2 %1110 }
0x1c17   :  { %v1113_v51 = vmul.f32 %v1111_v49, %v1105_v50 }
0x1c19   :  { %1115 = vrot.lane.b32.xlu1 %v1113_v51, %s1475_s23 }
0x1c1e   :  { %v628_v52 = vpop.permute.xlu2 %627 }
0x1c1f   :  { %v630_v53 = vmul.f32 %v628_v52, %v611_v26  ;;  %v1188_v26 = vld [vmem:[%s1889_s7] sm:$0xff] }
0x1c20   :  { %1216 = vmatpush.msra.mxu1 %v1188_v26 }
0x1c21   :  { %644 = vrot.lane.b32.xlu1 %v630_v53, %s1475_s23 }
0x1c8b   :  { %v1116_v56 = vpop.permute.xlu1 %1115 }
0x1c8c   :  { %v1118_v61 = vadd.f32 %v1116_v56, %v1108_v55 }
0x1c8e   :  { %1462 = vtanh.f32 %v1118_v61 }
0x1c93   :  { %v645_v62 = vpop.permute.xlu1 %644 }
0x1c94   :  { %v1463_v63 = vpop.eup %1462  ;;  %1317 = vmatmul.msk.f32.gmra.mxu3 %vm128_vm5, %v645_v62 }
0x1c95   :  { %1121 = vrot.lane.b32.xlu0 %v1463_v63, %s1474_s22 }
0x1d07   :  { %v1122_v57 = vpop.permute.xlu0 %1121 }
0x1d08   :  { %v1124_v58 = vmul.f32 %v1122_v57, %v1105_v50 }
0x1d0a   :  { %1126 = vrot.lane.b32.xlu2 %v1124_v58, %s1475_s23 }
0x1d17   :  { %v686_v59 = vpop.f32.mrf.mxu3 }
0x1d18   :  { %v687_v4 = vadd.f32 %v1748_v9, %v686_v59 }
0x1d64   :  { %v1127_v3 = vpop.permute.xlu2 %1126 }
0x1d65   :  { %1331 = vmatmul.msk.f32.vlgmr.msra.gmra.mxu2 %vm128_vm5, %v1127_v3 }
0x1de8   :  { %v1147_v60 = vpop.f32.mrf.mxu2 }
0x1de9   :  { %v1150_v7 = vadd.f32 %v1147_v60, %v687_v4 }
0x1deb   :  { %1464 = vtanh.f32 %v1150_v7  ;;  %v1332_v11 = vmul.f32 -1.442695, %v1150_v7 }
0x1ded   :  { %1466 = vpow2.f32 %v1332_v11 }
0x1df1   :  { %v1465_v10 = vpop.eup %1464 }
0x1df2   :  { %1173 = vrot.lane.b32.xlu0 %v1465_v10, %s1474_s22 }
0x1df3   :  { %v1467_v12 = vpop.eup %1466 }
0x1df4   :  { %v1154_v13 = vadd.f32 1.0, %v1467_v12 }
0x1df6   :  { %1468 = vrcp.f32 %v1154_v13  ;;  %v1166_v15 = vand.u32 2147483648, %v1154_v13  ;;  %vm1160_vm7 = vweird.f32 %v1154_v13  ;;  %v1164_v9 = vand.u32 2147483647, %v1154_v13 }
0x1df8   :  { %v1167_v16 = vor.u32 1.1754944e-38, %v1166_v15  ;;  %vm1165_vm9 = vcmp.eq.f32.partialorder %v1164_v9, 8.507059e+37 }
0x1dfc   :  { %v1469_v14 = vpop.eup %1468 }
0x1dfd   :  { %v1156_v8 = vmul.f32 %v1469_v14, %v1154_v13  ;;  %vm1161_vm6 = vweird.f32 %v1469_v14 }
0x1dfe   :  { %vm1162_vm8 = vmor %vm1160_vm7, %vm1161_vm6 }
0x1dff   :  { %v1157_v0 = vsub.f32 1.0, %v1156_v8 }
0x1e01   :  { %v1158_v2 = vmul.f32 %v1469_v14, %v1157_v0 }
0x1e03   :  { %v1159_v54 = vadd.f32 %v1469_v14, %v1158_v2 }
0x1e05   :  { %v1163_v5 = vsel %vm1162_vm8, %v1469_v14, %v1159_v54 }
0x1e06   :  { %v1168_v17 = vsel %vm1165_vm9, %v1167_v16, %v1163_v5 }
0x1e07   :  { %v1171_v19 = vmul.f32 %v1168_v17, %v1118_v61 }
0x1e64   :  { %v1174_v6 = vpop.permute.xlu0 %1173 }
0x1e65   :  { %v1176_v18 = vmul.f32 %v1174_v6, %v1168_v17 }
0x1e67   :  { %1178 = vrot.lane.b32.xlu1 %v1176_v18, %s1475_s23 }
0x1ed9   :  { %v1179_v20 = vpop.permute.xlu1 %1178 }
0x1eda   :  { %v1181_v21 = vadd.f32 %v1179_v20, %v1171_v19 }
0x1edc   :  { %1470 = vtanh.f32 %v1181_v21 }
0x1ee2   :  { %v1471_v22 = vpop.eup %1470 }
0x1ee3   :  { %1184 = vrot.lane.b32.xlu2 %v1471_v22, %s1474_s22 }
0x1f3d   :  { %v1185_v27 = vpop.permute.xlu2 %1184 }
0x1f3e   :  { %v1187_v28 = vmul.f32 %v1185_v27, %v1168_v17 }
0x1f40   :  { %1197 = vrot.lane.b32.xlu0 %v1187_v28, %s1475_s23 }
0x1fb2   :  { %v1198_v31 = vpop.permute.xlu0 %1197 }
0x1fb3   :  { %1333 = vmatmul.msk.f32.vlgmr.msra.gmra.mxu1 %vm128_vm5, %v1198_v31  ;;  %vm1281_vm5 = vcmask 64512  }
0x2030   :  { %v1218_v37 = vpop.f32.mrf.mxu1 }
0x2031   :  { %v1219_v36 = vadd.f32 %v1341_v35, %v1218_v37 }
0x2033   :  { %v1221_v38 = vmax.f32 %v1219_v36, 0.0 }
0x2035   :  { %1334 = vmatmul.msk.f32.vlgmr.msrb.gmra.mxu2 %vm62_vm0, %v1221_v38 }
0x20b8   :  { %v1248_v39 = vpop.f32.mrf.mxu2 }
0x20b9   :  { %v1249_v30 = vadd.f32 %v1342_v1, %v1248_v39 }
0x20bb   :  { %v1251_v40 = vmax.f32 %v1249_v30, 0.0 }
0x20bd   :  { %1335 = vmatmul.msk.f32.vlgmr.msrb.gmra.mxu0 %vm62_vm0, %v1251_v40 }
0x213a   :  { %v1278_v43 = vpop.f32.mrf.mxu0 }
0x213b   :  { %v1279_v44 = vadd.f32 %v1343_v42, %v1278_v43 }
0x213d   :  { %1282 = vst.msk [vmem:[%s1895_s13] sm:$0xff] %vm1281_vm5, %v1279_v44 }

</bundles_post_ra>
